<compile_context>
chip_gen: v7x
topology: tpu7x:2x2x1
jax: 0.10.0
libtpu: 0.0.40
codegen_flags: <defaults>
</compile_context>

<pallas_src>
import math

import numpy as np
import jax
import jax.numpy as jnp
from jax.experimental import pallas as pl
from jax.experimental.pallas import tpu as pltpu


def get_input_dim(mode):
    if mode == 'path_effnet':
        return 1280 * 7 * 7
    elif mode == 'path':
        return 512 * 7 * 7
    raise ValueError(f"unknown mode: {mode}")


PATH_DIM = 32      # path_dim
NUM_CLASSES = 1    # num_classes


def pathnet_head_kernel(x_ref, w1_ref, b1_ref, w2_ref, b2_ref,
                        feat_ref, haz_ref, acc_ref):
    """One (batch-tile i, K-tile k) step of: feat = x@W1+b1 ; hazard = feat@W2+b2."""
    k = pl.program_id(1)

    @pl.when(k == 0)
    def _():
        acc_ref[...] = jnp.zeros_like(acc_ref)

    # Accumulate this K-slab of the first Linear on the MXU (f32 accumulation).
    acc_ref[...] += jnp.dot(x_ref[...], w1_ref[...],
                            preferred_element_type=jnp.float32)

    @pl.when(k == pl.num_programs(1) - 1)
    def _():
        feat = acc_ref[...] + b1_ref[...]
        feat_ref[...] = feat.astype(feat_ref.dtype)
        haz = jnp.dot(feat, w2_ref[...],
                      preferred_element_type=jnp.float32) + b2_ref[...]
        haz_ref[...] = haz.astype(haz_ref.dtype)


def pathnet_forward(x_path, params, *, tb=256, tk=6272):
    """Run the PathNet head. x_path: (B, C, H, W) backbone output; returns (features, hazard)."""
    (w1, b1), (w2, b2) = params
    B = x_path.shape[0]
    x = x_path.reshape(B, -1).astype(jnp.float32)   # x.view(x.size(0), -1)
    K = x.shape[1]
    assert w1.shape == (K, PATH_DIM)

    tb = min(tb, B)
    tk = min(tk, K)
    assert K % tk == 0, "tk must divide the flattened feature dim"
    grid = (pl.cdiv(B, tb), K // tk)

    grid_spec = pltpu.PrefetchScalarGridSpec(
        num_scalar_prefetch=0,
        grid=grid,
        in_specs=[
            pl.BlockSpec((tb, tk), lambda i, k: (i, k)),                  # x : streamed
            pl.BlockSpec((tk, PATH_DIM), lambda i, k: (k, 0)),            # W1: K-tiled
            pl.BlockSpec((1, PATH_DIM), lambda i, k: (0, 0)),             # b1: resident
            pl.BlockSpec((PATH_DIM, NUM_CLASSES), lambda i, k: (0, 0)),   # W2: resident
            pl.BlockSpec((1, NUM_CLASSES), lambda i, k: (0, 0)),          # b2: resident
        ],
        out_specs=(
            pl.BlockSpec((tb, PATH_DIM), lambda i, k: (i, 0)),            # features
            pl.BlockSpec((tb, NUM_CLASSES), lambda i, k: (i, 0)),         # hazard
        ),
        scratch_shapes=[pltpu.VMEM((tb, PATH_DIM), jnp.float32)],
    )

    feat, haz = pl.pallas_call(
        pathnet_head_kernel,
        out_shape=(
            jax.ShapeDtypeStruct((B, PATH_DIM), jnp.float32),
            jax.ShapeDtypeStruct((B, NUM_CLASSES), jnp.float32),
        ),
        grid_spec=grid_spec,
        compiler_params=pltpu.CompilerParams(
            dimension_semantics=("parallel", "arbitrary"),
            vmem_limit_bytes=32 * 1024 * 1024,
        ),
    )(x, w1, b1, w2, b2)
    return feat, haz


def init_pathnet_params(key, input_dim=None):
    """nn.Linear default init: U(-1/sqrt(fan_in), 1/sqrt(fan_in)); weights stored (in, out)."""
    if input_dim is None:
        input_dim = get_input_dim('path')
    k1, k2, k3, k4 = jax.random.split(key, 4)
    bound1 = 1.0 / math.sqrt(input_dim)
    w1 = jax.random.uniform(k1, (input_dim, PATH_DIM), jnp.float32, -bound1, bound1)
    b1 = jax.random.uniform(k2, (1, PATH_DIM), jnp.float32, -bound1, bound1)
    bound2 = 1.0 / math.sqrt(PATH_DIM)
    w2 = jax.random.uniform(k3, (PATH_DIM, NUM_CLASSES), jnp.float32, -bound2, bound2)
    b2 = jax.random.uniform(k4, (1, NUM_CLASSES), jnp.float32, -bound2, bound2)
    return [(w1, b1), (w2, b2)]


if __name__ == "__main__":
    key = jax.random.PRNGKey(0)
    k_param, k_x = jax.random.split(key)

    params = init_pathnet_params(k_param)

    # mode='path': backbone ('features') output / kernel input is (B, 512, 7, 7) -> flattened 25088
    B, C, H, W = 8, 512, 7, 7
    x_path = jax.random.normal(k_x, (B, C, H, W), dtype=jnp.float32)

    features, hazard = pathnet_forward(x_path, params)
    jax.block_until_ready((features, hazard))

    # Sanity check against a host-side float64 reference.
    (w1, b1), (w2, b2) = params
    x_np = np.asarray(x_path, dtype=np.float64).reshape(B, -1)
    f_ref = x_np @ np.asarray(w1, np.float64) + np.asarray(b1, np.float64)
    h_ref = f_ref @ np.asarray(w2, np.float64) + np.asarray(b2, np.float64)

    assert features.shape == (B, PATH_DIM)
    assert hazard.shape == (B, NUM_CLASSES)
    assert np.allclose(np.asarray(features, np.float64), f_ref, atol=2e-2, rtol=2e-2)
    assert np.allclose(np.asarray(hazard, np.float64), h_ref, atol=2e-2, rtol=2e-2)

    print("KERNEL_OK")
</pallas_src>

<mosaic_0001>
module attributes {stable_mosaic.version = 11 : i64} {
  func.func @pathnet_head_kernel(%arg0: i32, %arg1: i32, %arg2: memref<8x6272xf32, #tpu.memory_space<vmem>>, %arg3: memref<6272x32xf32, #tpu.memory_space<vmem>>, %arg4: memref<1x32xf32, #tpu.memory_space<vmem>>, %arg5: memref<32x1xf32, #tpu.memory_space<vmem>>, %arg6: memref<1x1xf32, #tpu.memory_space<vmem>>, %arg7: memref<8x32xf32, #tpu.memory_space<vmem>>, %arg8: memref<8x1xf32, #tpu.memory_space<vmem>>, %arg9: memref<8x32xf32, #tpu.memory_space<vmem>>) attributes {dimension_semantics = [#tpu.dimension_semantics<parallel>, #tpu.dimension_semantics<arbitrary>], iteration_bounds = array<i64: 1, 4>, scalar_prefetch = 0 : i64, scratch_operands = 1 : i64, tpu.core_type = #tpu.core_type<tc>, window_params = [{transform_indices = @transform_0, window_bounds = array<i64: 8, 6272>}, {transform_indices = @transform_1, window_bounds = array<i64: 6272, 32>}, {pipeline_mode = #tpu.pipeline_mode<synchronous>, transform_indices = @transform_2, window_bounds = array<i64: 1, 32>}, {pipeline_mode = #tpu.pipeline_mode<synchronous>, transform_indices = @transform_3, window_bounds = array<i64: 32, 1>}, {pipeline_mode = #tpu.pipeline_mode<synchronous>, transform_indices = @transform_4, window_bounds = array<i64: 1, 1>}, {transform_indices = @transform_5, window_bounds = array<i64: 8, 32>}, {transform_indices = @transform_6, window_bounds = array<i64: 8, 1>}]} {
    %c0_i32 = arith.constant 0 : i32
    %0 = arith.cmpi eq, %arg1, %c0_i32 : i32
    %1 = arith.extui %0 : i1 to i32
    %c0_i32_0 = arith.constant 0 : i32
    %2 = arith.cmpi ne, %1, %c0_i32_0 : i32
    scf.if %2 {
      %cst_9 = arith.constant 0.000000e+00 : f32
      %12 = vector.broadcast %cst_9 : f32 to vector<8x32xf32>
      %c0_10 = arith.constant 0 : index
      %c0_11 = arith.constant 0 : index
      %13 = vector.load %arg9[%c0_10, %c0_11] : memref<8x32xf32, #tpu.memory_space<vmem>>, vector<8x32xf32>
      tpu.vector_store %arg9[%c0_10, %c0_11], %12 {strides = array<i32>} : memref<8x32xf32, #tpu.memory_space<vmem>>, vector<8x32xf32>,
    } else {
    }
    %c0 = arith.constant 0 : index
    %c0_1 = arith.constant 0 : index
    %3 = vector.load %arg9[%c0, %c0_1] : memref<8x32xf32, #tpu.memory_space<vmem>>, vector<8x32xf32>
    %c0_2 = arith.constant 0 : index
    %c0_3 = arith.constant 0 : index
    %4 = vector.load %arg2[%c0_2, %c0_3] : memref<8x6272xf32, #tpu.memory_space<vmem>>, vector<8x6272xf32>
    %c0_4 = arith.constant 0 : index
    %c0_5 = arith.constant 0 : index
    %5 = vector.load %arg3[%c0_4, %c0_5] : memref<6272x32xf32, #tpu.memory_space<vmem>>, vector<6272x32xf32>
    %cst = arith.constant dense<0.000000e+00> : vector<8x32xf32>
    %6 = tpu.matmul %4, %5, %cst {dimension_numbers = #tpu.dot_dimension_numbers<[1], [0], [0], [1], [0, 0, 1, 1], [], []>} : vector<8x6272xf32>, vector<6272x32xf32>, vector<8x32xf32> -> vector<8x32xf32>
    %7 = arith.addf %3, %6 : vector<8x32xf32>
    %c0_6 = arith.constant 0 : index
    %c0_7 = arith.constant 0 : index
    %8 = vector.load %arg9[%c0_6, %c0_7] : memref<8x32xf32, #tpu.memory_space<vmem>>, vector<8x32xf32>
    tpu.vector_store %arg9[%c0_6, %c0_7], %7 {strides = array<i32>} : memref<8x32xf32, #tpu.memory_space<vmem>>, vector<8x32xf32>,
    %c3_i32 = arith.constant 3 : i32
    %9 = arith.cmpi eq, %arg1, %c3_i32 : i32
    %10 = arith.extui %9 : i1 to i32
    %c0_i32_8 = arith.constant 0 : i32
    %11 = arith.cmpi ne, %10, %c0_i32_8 : i32
    scf.if %11 {
      %c0_9 = arith.constant 0 : index
      %c0_10 = arith.constant 0 : index
      %12 = vector.load %arg9[%c0_9, %c0_10] : memref<8x32xf32, #tpu.memory_space<vmem>>, vector<8x32xf32>
      %c0_11 = arith.constant 0 : index
      %c0_12 = arith.constant 0 : index
      %13 = vector.load %arg4[%c0_11, %c0_12] : memref<1x32xf32, #tpu.memory_space<vmem>>, vector<1x32xf32>
      %14 = vector.broadcast %13 : vector<1x32xf32> to vector<8x32xf32>
      %15 = arith.addf %12, %14 : vector<8x32xf32>
      %c0_13 = arith.constant 0 : index
      %c0_14 = arith.constant 0 : index
      %16 = vector.load %arg7[%c0_13, %c0_14] : memref<8x32xf32, #tpu.memory_space<vmem>>, vector<8x32xf32>
      tpu.vector_store %arg7[%c0_13, %c0_14], %15 {strides = array<i32>} : memref<8x32xf32, #tpu.memory_space<vmem>>, vector<8x32xf32>,
      %c0_15 = arith.constant 0 : index
      %c0_16 = arith.constant 0 : index
      %17 = vector.load %arg5[%c0_15, %c0_16] : memref<32x1xf32, #tpu.memory_space<vmem>>, vector<32x1xf32>
      %cst_17 = arith.constant dense<0.000000e+00> : vector<8x1xf32>
      %18 = tpu.matmul %15, %17, %cst_17 {dimension_numbers = #tpu.dot_dimension_numbers<[1], [0], [0], [1], [0, 0, 1, 1], [], []>} : vector<8x32xf32>, vector<32x1xf32>, vector<8x1xf32> -> vector<8x1xf32>
      %c0_18 = arith.constant 0 : index
      %c0_19 = arith.constant 0 : index
      %19 = vector.load %arg6[%c0_18, %c0_19] : memref<1x1xf32, #tpu.memory_space<vmem>>, vector<1x1xf32>
      %20 = vector.broadcast %19 : vector<1x1xf32> to vector<8x1xf32>
      %21 = arith.addf %18, %20 : vector<8x1xf32>
      %c0_20 = arith.constant 0 : index
      %c0_21 = arith.constant 0 : index
      %22 = vector.load %arg8[%c0_20, %c0_21] : memref<8x1xf32, #tpu.memory_space<vmem>>, vector<8x1xf32>
      tpu.vector_store %arg8[%c0_20, %c0_21], %21 {strides = array<i32>} : memref<8x1xf32, #tpu.memory_space<vmem>>, vector<8x1xf32>,
    } else {
    }
    return
  }
  func.func @transform_0(%arg0: i32, %arg1: i32) -> (i32, i32) {
    %c0_i32 = arith.constant 0 : i32
    return %arg0, %arg1 : i32, i32
  }
  func.func @transform_1(%arg0: i32, %arg1: i32) -> (i32, i32) {
    %c0_i32 = arith.constant 0 : i32
    %c0_i32_0 = arith.constant 0 : i32
    return %arg1, %c0_i32 : i32, i32
  }
  func.func @transform_2(%arg0: i32, %arg1: i32) -> (i32, i32) {
    %c0_i32 = arith.constant 0 : i32
    %c0_i32_0 = arith.constant 0 : i32
    %c0_i32_1 = arith.constant 0 : i32
    return %c0_i32, %c0_i32_0 : i32, i32
  }
  func.func @transform_3(%arg0: i32, %arg1: i32) -> (i32, i32) {
    %c0_i32 = arith.constant 0 : i32
    %c0_i32_0 = arith.constant 0 : i32
    %c0_i32_1 = arith.constant 0 : i32
    return %c0_i32, %c0_i32_0 : i32, i32
  }
  func.func @transform_4(%arg0: i32, %arg1: i32) -> (i32, i32) {
    %c0_i32 = arith.constant 0 : i32
    %c0_i32_0 = arith.constant 0 : i32
    %c0_i32_1 = arith.constant 0 : i32
    return %c0_i32, %c0_i32_0 : i32, i32
  }
  func.func @transform_5(%arg0: i32, %arg1: i32) -> (i32, i32) {
    %c0_i32 = arith.constant 0 : i32
    %c0_i32_0 = arith.constant 0 : i32
    return %arg0, %c0_i32 : i32, i32
  }
  func.func @transform_6(%arg0: i32, %arg1: i32) -> (i32, i32) {
    %c0_i32 = arith.constant 0 : i32
    %c0_i32_0 = arith.constant 0 : i32
    return %arg0, %c0_i32 : i32, i32
  }
}

</mosaic_0001>

<bundles_post_ra>
// kernel: tpu_custom_call.1
= control target key start
LH: loop header
LB: loop body
LE: loop exit
PB: predicated region body
PF: predicated region fallthrough
CT: control target
= control target key end

     0   :  { %s5902_s0 = inlined_call_operand.vmem [shape: f32[8,25088], index: 0, kind: input, shape index: {}]   ;;  %s5903_s1 = inlined_call_operand.vmem [shape: f32[25088,32], index: 1, kind: input, shape index: {}]   ;;  %s5904_s2 = inlined_call_operand.vmem [shape: f32[1,32], index: 2, kind: input, shape index: {}]   ;;  %s5905_s3 = inlined_call_operand.vmem [shape: f32[32,1], index: 3, kind: input, shape index: {}]   ;;  %s5906_s4 = inlined_call_operand.<no memory space> [shape: f32[1,1], index: 4, kind: input, shape index: {}]   ;;  %s5907_s5 = inlined_call_operand.hbm [shape: f32[8,32], index: 5, kind: output, shape index: {0}]   ;;  %s5908_s6 = inlined_call_operand.vmem [shape: f32[8,1], index: 6, kind: output, shape index: {1}]  }
   0x1   :  { %v12_v0 = vstv %s5906_s4 }
   0x2   :  { %13 = vst [vmem:[#allocation3] sm:$0x1] %v12_v0 }
   0x3   :  { %14 = vsyncpa [#allocation5], 0  ;;  %s4964_s23 = smov 0   ;;  %s4966_s24 = smov 0  }
   0x4   :  { %s4968_s25 = smov 0  }
   0x5 LB: > { %s3104_s4 = sadd.s32 4294967295, %s4916_s25   ;;  %s29_s26 = sadd.s32 1, %s4912_s24  ;;  %s4916_s25 = sphi %s4968_s25, %s20_s25   ;;  %s4912_s24 = sphi %s4966_s24, %s5911_s24   ;;  %s4908_s23 = sphi %s4964_s23, %s5910_s23  }
   0x6   : > { %p30_p0 = scmp.ge.s32.totalorder %s29_s26, 4  ;;  %p3107_p1 = scmp.ge.s32.totalorder %s4916_s25, 1 }
   0x7   : > { %p248_p2 = scmp.lt.s32.totalorder %s4916_s25, 5 }
   0x8   : > { %s5913_s26 = smov (%p30_p0, %s29_s26), 0 }
   0x9   : > { %p249_p3 = pnand %p3107_p1, %p248_p2 }
   0xa   : > { %s286_s27 = smul.u32 (!%p249_p3), 49, %s4908_s23  ;;  %p3110_p6 = scmp.ne.s32.totalorder (!%p249_p3), %s4908_s23, 0 }
   0xb   : > { %252 = sbr.rel (%p249_p3) target bundleno = 914 (0x392), region = 40 }
   0xc   : > { %s296_s28 = smul.u32 (!%p249_p3), 784, %s4908_s23  ;;  %p289_p4 = scmp.lt.s32.totalorder (!%p249_p3), %s286_s27, 195 }
   0xe   : > { %p297_p5 = scmp.lt.s32.totalorder (!%p249_p3), %s296_s28, 3135 }
  0x12   : > { %s5915_s27 = smov (!%p289_p4, %s286_s27), 195  ;;  %s5917_s28 = smov (!%p297_p5, %s296_s28), 3135 }
  0x13   : > { %s3108_s29 = sshll.u32 %s5915_s27, 3  ;;  %s3109_s9 = sshll.u32 %s5917_s28, 3  ;;  %vm310_vm0 = vcmask (!%p3110_p6), 261120   ;;  %v4918_v1 = vmov (!%p3110_p6), 0.0  }
  0x14   : > { %s4990_s8 = scalar_lea.vmem %s5902_s0, %s3108_s29  ;;  %s4995_s12 = scalar_lea.vmem %s5903_s1, %s3109_s9  ;;  %311 = vst.msk [vmem:[#allocation2] sm:$0xff] (!%p3110_p6), %vm310_vm0, %v4918_v1 }
  0x15   : > { %309 = sbr.rel (%p3110_p6) target bundleno = 28 (0x1c), region = 44 }
  0x1c PF: > { %v378_v2 = vld [vmem:[%s4995_s12 + $0x80] sm:$0xff]  ;;  %v379_v3 = vld [vmem:[%s4995_s12 + $0x88] sm:$0xff]  ;;  %v380_v13 = vld [vmem:[%s4995_s12 + $0x90] sm:$0xff]  ;;  %vm4920_vm1 = vmmov 0   ;;  %vm2897_vm2 = vcmask 261120   ;;  %p3111_p7 = scmp.ne.s32.totalorder %s4908_s23, 3 }
  0x1d   : > { %v410_v4 = vld [vmem:[%s4995_s12 + $0x180] sm:$0xff]  ;;  %v4028_v5 = vpack.c.bf16 %v379_v3, %v378_v2  ;;  %v411_v6 = vld [vmem:[%s4995_s12 + $0x188] sm:$0xff]  ;;  %v381_v15 = vld [vmem:[%s4995_s12 + $0x98] sm:$0xff]  ;;  %vm4923_vm3 = vmmov (!%p3111_p7), 0   ;;  %vm2997_vm4 = vcmask (!%p3111_p7), 7168  }
  0x1e   : > { %v362_v7 = vld [vmem:[%s4995_s12] sm:$0xff]  ;;  %v363_v8 = vld [vmem:[%s4995_s12 + $0x8] sm:$0xff]  ;;  %v4060_v9 = vpack.c.bf16 %v411_v6, %v410_v4  ;;  %v412_v16 = vld [vmem:[%s4995_s12 + $0x190] sm:$0xff]  ;;  %v4032_v18 = vpack.c.bf16 %v381_v15, %v380_v13 }
  0x1f   : > { %v4030_v10 = vpack.c.bf16 %v363_v8, %v362_v7  ;;  %v394_v11 = vld [vmem:[%s4995_s12 + $0x100] sm:$0xff]  ;;  %v395_v12 = vld [vmem:[%s4995_s12 + $0x108] sm:$0xff]  ;;  %4029 = vmatprep.subr.bf16.mxu0 %v4028_v5  ;;  %v413_v17 = vld [vmem:[%s4995_s12 + $0x198] sm:$0xff] }
  0x20   : > { %v4062_v14 = vpack.c.bf16 %v395_v12, %v394_v11  ;;  %4061 = vmatprep.subr.bf16.mxu1 %v4060_v9  ;;  %v4064_v19 = vpack.c.bf16 %v413_v17, %v412_v16  ;;  %v364_v20 = vld [vmem:[%s4995_s12 + $0x10] sm:$0xff]  ;;  %v365_v21 = vld [vmem:[%s4995_s12 + $0x18] sm:$0xff]  ;;  %v382_v25 = vld [vmem:[%s4995_s12 + $0xa0] sm:$0xff] }
  0x21   : > { %4031 = vmatpush3.bf16.msra.mxu0 %v4030_v10  ;;  %v396_v22 = vld [vmem:[%s4995_s12 + $0x110] sm:$0xff]  ;;  %v4034_v23 = vpack.c.bf16 %v365_v21, %v364_v20  ;;  %v397_v24 = vld [vmem:[%s4995_s12 + $0x118] sm:$0xff]  ;;  %v383_v26 = vld [vmem:[%s4995_s12 + $0xa8] sm:$0xff] }
  0x22   : > { %4063 = vmatpush3.bf16.msra.mxu1 %v4062_v14  ;;  %4033 = vmatprep.subr.bf16.mxu0 %v4032_v18  ;;  %v4066_v27 = vpack.c.bf16 %v397_v24, %v396_v22  ;;  %v4036_v28 = vpack.c.bf16 %v383_v26, %v382_v25  ;;  %v414_v29 = vld [vmem:[%s4995_s12 + $0x1a0] sm:$0xff]  ;;  %v415_v30 = vld [vmem:[%s4995_s12 + $0x1a8] sm:$0xff]  ;;  %v384_v37 = vld [vmem:[%s4995_s12 + $0xb0] sm:$0xff] }
  0x23   : > { %4065 = vmatprep.subr.bf16.mxu1 %v4064_v19  ;;  %v366_v31 = vld [vmem:[%s4995_s12 + $0x20] sm:$0xff]  ;;  %v4068_v32 = vpack.c.bf16 %v415_v30, %v414_v29  ;;  %v367_v33 = vld [vmem:[%s4995_s12 + $0x28] sm:$0xff]  ;;  %v385_v38 = vld [vmem:[%s4995_s12 + $0xb8] sm:$0xff] }
  0x24   : > { %v398_v34 = vld [vmem:[%s4995_s12 + $0x120] sm:$0xff]  ;;  %v399_v35 = vld [vmem:[%s4995_s12 + $0x128] sm:$0xff]  ;;  %v4038_v36 = vpack.c.bf16 %v367_v33, %v366_v31  ;;  %v416_v39 = vld [vmem:[%s4995_s12 + $0x1b0] sm:$0xff]  ;;  %v4040_v41 = vpack.c.bf16 %v385_v38, %v384_v37 }
  0x25   : > { %4035 = vmatpush3.bf16.msra.mxu0 %v4034_v23  ;;  %v4070_v40 = vpack.c.bf16 %v399_v35, %v398_v34  ;;  %v417_v42 = vld [vmem:[%s4995_s12 + $0x1b8] sm:$0xff]  ;;  %v368_v43 = vld [vmem:[%s4995_s12 + $0x30] sm:$0xff]  ;;  %v386_v48 = vld [vmem:[%s4995_s12 + $0xc0] sm:$0xff] }
  0x26   : > { %4067 = vmatpush3.bf16.msra.mxu1 %v4066_v27  ;;  %4037 = vmatprep.subr.bf16.mxu0 %v4036_v28  ;;  %v369_v44 = vld [vmem:[%s4995_s12 + $0x38] sm:$0xff]  ;;  %v4072_v45 = vpack.c.bf16 %v417_v42, %v416_v39  ;;  %v400_v46 = vld [vmem:[%s4995_s12 + $0x130] sm:$0xff]  ;;  %v387_v49 = vld [vmem:[%s4995_s12 + $0xc8] sm:$0xff] }
  0x27   : > { %4069 = vmatprep.subr.bf16.mxu1 %v4068_v32  ;;  %v401_v47 = vld [vmem:[%s4995_s12 + $0x138] sm:$0xff]  ;;  %v418_v50 = vld [vmem:[%s4995_s12 + $0x1c0] sm:$0xff]  ;;  %v419_v51 = vld [vmem:[%s4995_s12 + $0x1c8] sm:$0xff]  ;;  %v4042_v52 = vpack.c.bf16 %v369_v44, %v368_v43  ;;  %v4044_v54 = vpack.c.bf16 %v387_v49, %v386_v48 }
  0x28   : > { %v4074_v53 = vpack.c.bf16 %v401_v47, %v400_v46  ;;  %v370_v55 = vld [vmem:[%s4995_s12 + $0x40] sm:$0xff]  ;;  %v371_v56 = vld [vmem:[%s4995_s12 + $0x48] sm:$0xff]  ;;  %v4076_v58 = vpack.c.bf16 %v419_v51, %v418_v50  ;;  %v388_v60 = vld [vmem:[%s4995_s12 + $0xd0] sm:$0xff] }
  0x29   : > { %4039 = vmatpush3.bf16.msra.mxu0 %v4038_v36  ;;  %v402_v57 = vld [vmem:[%s4995_s12 + $0x140] sm:$0xff]  ;;  %v403_v59 = vld [vmem:[%s4995_s12 + $0x148] sm:$0xff]  ;;  %v389_v61 = vld [vmem:[%s4995_s12 + $0xd8] sm:$0xff]  ;;  %v4046_v0 = vpack.c.bf16 %v371_v56, %v370_v55 }
  0x2a   : > { %4071 = vmatpush3.bf16.msra.mxu1 %v4070_v40  ;;  %4041 = vmatprep.subr.bf16.mxu0 %v4040_v41  ;;  %v420_v62 = vld [vmem:[%s4995_s12 + $0x1d0] sm:$0xff]  ;;  %v421_v63 = vld [vmem:[%s4995_s12 + $0x1d8] sm:$0xff]  ;;  %v4078_v1 = vpack.c.bf16 %v403_v59, %v402_v57  ;;  %v4048_v2 = vpack.c.bf16 %v389_v61, %v388_v60  ;;  %v390_v8 = vld [vmem:[%s4995_s12 + $0xe0] sm:$0xff] }
  0x2b   : > { %4073 = vmatprep.subr.bf16.mxu1 %v4072_v45  ;;  %v372_v3 = vld [vmem:[%s4995_s12 + $0x50] sm:$0xff]  ;;  %v373_v4 = vld [vmem:[%s4995_s12 + $0x58] sm:$0xff]  ;;  %v4080_v6 = vpack.c.bf16 %v421_v63, %v420_v62  ;;  %v391_v9 = vld [vmem:[%s4995_s12 + $0xe8] sm:$0xff] }
  0x2c   : > { %v404_v5 = vld [vmem:[%s4995_s12 + $0x150] sm:$0xff]  ;;  %v405_v7 = vld [vmem:[%s4995_s12 + $0x158] sm:$0xff]  ;;  %v422_v10 = vld [vmem:[%s4995_s12 + $0x1e0] sm:$0xff]  ;;  %v4050_v12 = vpack.c.bf16 %v373_v4, %v372_v3  ;;  %v4052_v16 = vpack.c.bf16 %v391_v9, %v390_v8 }
  0x2d   : > { %4043 = vmatpush3.bf16.msra.mxu0 %v4042_v52  ;;  %v423_v11 = vld [vmem:[%s4995_s12 + $0x1e8] sm:$0xff]  ;;  %v374_v13 = vld [vmem:[%s4995_s12 + $0x60] sm:$0xff]  ;;  %v4082_v15 = vpack.c.bf16 %v405_v7, %v404_v5  ;;  %v316_v19 = vld [vmem:[%s4990_s8 + $0x18] sm:$0xff] }
  0x2e   : > { %4075 = vmatpush3.bf16.msra.mxu1 %v4074_v53  ;;  %4045 = vmatprep.subr.bf16.mxu0 %v4044_v54  ;;  %v375_v14 = vld [vmem:[%s4995_s12 + $0x68] sm:$0xff]  ;;  %v406_v17 = vld [vmem:[%s4995_s12 + $0x160] sm:$0xff]  ;;  %v4084_v20 = vpack.c.bf16 %v423_v11, %v422_v10  ;;  %v392_v22 = vld [vmem:[%s4995_s12 + $0xf0] sm:$0xff] }
  0x2f   : > { %4077 = vmatprep.subr.bf16.mxu1 %v4076_v58  ;;  %v314_v18 = vld [vmem:[%s4990_s8 + $0x8] sm:$0xff]  ;;  %v393_v23 = vld [vmem:[%s4995_s12 + $0xf8] sm:$0xff]  ;;  %v424_v24 = vld [vmem:[%s4995_s12 + $0x1f0] sm:$0xff]  ;;  %1280 = vmatprep.mubr.f32.mxu1 %v316_v19  ;;  %v4054_v26 = vpack.c.bf16 %v375_v14, %v374_v13 }
  0x30   : > { %v407_v21 = vld [vmem:[%s4995_s12 + $0x168] sm:$0xff]  ;;  %1210 = vmatprep.mubr.f32.mxu0 %v314_v18  ;;  %v425_v25 = vld [vmem:[%s4995_s12 + $0x1f8] sm:$0xff]  ;;  %v4056_v28 = vpack.c.bf16 %v393_v23, %v392_v22  ;;  %v376_v29 = vld [vmem:[%s4995_s12 + $0x70] sm:$0xff] }
  0x31   : > { %4047 = vmatpush3.bf16.msra.mxu0 %v4046_v0  ;;  %v4086_v27 = vpack.c.bf16 %v407_v21, %v406_v17  ;;  %v377_v30 = vld [vmem:[%s4995_s12 + $0x78] sm:$0xff]  ;;  %v408_v31 = vld [vmem:[%s4995_s12 + $0x170] sm:$0xff]  ;;  %v4088_v32 = vpack.c.bf16 %v425_v25, %v424_v24  ;;  %v442_v34 = vld [vmem:[%s4995_s12 + $0x280] sm:$0xff] }
  0x32   : > { %4079 = vmatpush3.bf16.msra.mxu1 %v4078_v1  ;;  %4049 = vmatprep.subr.bf16.mxu0 %v4048_v2  ;;  %v409_v33 = vld [vmem:[%s4995_s12 + $0x178] sm:$0xff]  ;;  %v443_v35 = vld [vmem:[%s4995_s12 + $0x288] sm:$0xff]  ;;  %v474_v36 = vld [vmem:[%s4995_s12 + $0x380] sm:$0xff]  ;;  %v4058_v38 = vpack.c.bf16 %v377_v30, %v376_v29 }
  0x33   : > { %4081 = vmatprep.subr.bf16.mxu1 %v4080_v6  ;;  %v475_v37 = vld [vmem:[%s4995_s12 + $0x388] sm:$0xff]  ;;  %v4090_v39 = vpack.c.bf16 %v409_v33, %v408_v31  ;;  %v4092_v40 = vpack.c.bf16 %v443_v35, %v442_v34  ;;  %v426_v41 = vld [vmem:[%s4995_s12 + $0x200] sm:$0xff]  ;;  %v444_v46 = vld [vmem:[%s4995_s12 + $0x290] sm:$0xff] }
  0x34   : > { %v427_v42 = vld [vmem:[%s4995_s12 + $0x208] sm:$0xff]  ;;  %v458_v43 = vld [vmem:[%s4995_s12 + $0x300] sm:$0xff]  ;;  %v4124_v44 = vpack.c.bf16 %v475_v37, %v474_v36  ;;  %v445_v47 = vld [vmem:[%s4995_s12 + $0x298] sm:$0xff] }
  0x35   : > { %4051 = vmatpush3.bf16.msra.mxu0 %v4050_v12  ;;  %v459_v45 = vld [vmem:[%s4995_s12 + $0x308] sm:$0xff]  ;;  %v476_v48 = vld [vmem:[%s4995_s12 + $0x390] sm:$0xff]  ;;  %v477_v49 = vld [vmem:[%s4995_s12 + $0x398] sm:$0xff]  ;;  %v4094_v52 = vpack.c.bf16 %v427_v42, %v426_v41  ;;  %v4096_v54 = vpack.c.bf16 %v445_v47, %v444_v46 }
  0x36   : > { %4083 = vmatpush3.bf16.msra.mxu1 %v4082_v15  ;;  %4053 = vmatprep.subr.bf16.mxu0 %v4052_v16  ;;  %v313_v50 = vld [vmem:[%s4990_s8] sm:$0xff]  ;;  %v315_v51 = vld [vmem:[%s4990_s8 + $0x10] sm:$0xff]  ;;  %v4126_v53 = vpack.c.bf16 %v459_v45, %v458_v43  ;;  %v429_v56 = vld [vmem:[%s4995_s12 + $0x218] sm:$0xff]  ;;  %v4128_v58 = vpack.c.bf16 %v477_v49, %v476_v48 }
  0x37   : > { %4085 = vmatprep.subr.bf16.mxu1 %v4084_v20  ;;  %v428_v55 = vld [vmem:[%s4995_s12 + $0x210] sm:$0xff]  ;;  %v461_v59 = vld [vmem:[%s4995_s12 + $0x318] sm:$0xff]  ;;  %v446_v60 = vld [vmem:[%s4995_s12 + $0x2a0] sm:$0xff] }
  0x38   : > { %v460_v57 = vld [vmem:[%s4995_s12 + $0x310] sm:$0xff]  ;;  %v447_v61 = vld [vmem:[%s4995_s12 + $0x2a8] sm:$0xff]  ;;  %v478_v62 = vld [vmem:[%s4995_s12 + $0x3a0] sm:$0xff]  ;;  %v4098_v0 = vpack.c.bf16 %v429_v56, %v428_v55 }
  0x39   : > { %4055 = vmatpush3.bf16.msra.mxu0 %v4054_v26  ;;  %v479_v63 = vld [vmem:[%s4995_s12 + $0x3a8] sm:$0xff]  ;;  %v4130_v1 = vpack.c.bf16 %v461_v59, %v460_v57  ;;  %v4100_v2 = vpack.c.bf16 %v447_v61, %v446_v60  ;;  %v430_v3 = vld [vmem:[%s4995_s12 + $0x220] sm:$0xff]  ;;  %v448_v8 = vld [vmem:[%s4995_s12 + $0x2b0] sm:$0xff] }
  0x3a   : > { %4087 = vmatpush3.bf16.msra.mxu1 %v4086_v27  ;;  %4057 = vmatprep.subr.bf16.mxu0 %v4056_v28  ;;  %v431_v4 = vld [vmem:[%s4995_s12 + $0x228] sm:$0xff]  ;;  %v462_v5 = vld [vmem:[%s4995_s12 + $0x320] sm:$0xff]  ;;  %v4132_v6 = vpack.c.bf16 %v479_v63, %v478_v62  ;;  %v449_v9 = vld [vmem:[%s4995_s12 + $0x2b8] sm:$0xff] }
  0x3b   : > { %4089 = vmatprep.subr.bf16.mxu1 %v4088_v32  ;;  %v463_v7 = vld [vmem:[%s4995_s12 + $0x328] sm:$0xff]  ;;  %v480_v10 = vld [vmem:[%s4995_s12 + $0x3b0] sm:$0xff]  ;;  %v481_v11 = vld [vmem:[%s4995_s12 + $0x3b8] sm:$0xff]  ;;  %v4102_v12 = vpack.c.bf16 %v431_v4, %v430_v3  ;;  %v4104_v14 = vpack.c.bf16 %v449_v9, %v448_v8 }
  0x3c   : > { %v4134_v13 = vpack.c.bf16 %v463_v7, %v462_v5  ;;  %v432_v15 = vld [vmem:[%s4995_s12 + $0x230] sm:$0xff]  ;;  %v433_v16 = vld [vmem:[%s4995_s12 + $0x238] sm:$0xff]  ;;  %v4136_v18 = vpack.c.bf16 %v481_v11, %v480_v10  ;;  %v450_v20 = vld [vmem:[%s4995_s12 + $0x2c0] sm:$0xff] }
  0x3d   : > { %4059 = vmatpush3.bf16.msra.mxu0 %v4058_v38  ;;  %v464_v17 = vld [vmem:[%s4995_s12 + $0x330] sm:$0xff]  ;;  %v465_v19 = vld [vmem:[%s4995_s12 + $0x338] sm:$0xff]  ;;  %v451_v21 = vld [vmem:[%s4995_s12 + $0x2c8] sm:$0xff]  ;;  %v4106_v25 = vpack.c.bf16 %v433_v16, %v432_v15 }
  0x3e   : > { %4091 = vmatpush3.bf16.msra.mxu1 %v4090_v39  ;;  %4093 = vmatprep.subr.bf16.mxu0 %v4092_v40  ;;  %v482_v22 = vld [vmem:[%s4995_s12 + $0x3c0] sm:$0xff]  ;;  %v483_v23 = vld [vmem:[%s4995_s12 + $0x3c8] sm:$0xff]  ;;  %v4138_v27 = vpack.c.bf16 %v465_v19, %v464_v17  ;;  %v4108_v28 = vpack.c.bf16 %v451_v21, %v450_v20  ;;  %v320_v31 = vld [vmem:[%s4990_s8 + $0x38] sm:$0xff] }
  0x3f   : > { %4125 = vmatprep.subr.bf16.mxu1 %v4124_v44  ;;  %v318_v24 = vld [vmem:[%s4990_s8 + $0x28] sm:$0xff]  ;;  %v434_v26 = vld [vmem:[%s4995_s12 + $0x240] sm:$0xff]  ;;  %v4140_v32 = vpack.c.bf16 %v483_v23, %v482_v22  ;;  %v452_v34 = vld [vmem:[%s4995_s12 + $0x2d0] sm:$0xff] }
  0x40   : > { %1211 = vmatmul.mubr.f32.vlgmr.msra.gmra.mrb[0].mxu0 %v313_v50  ;;  %v435_v29 = vld [vmem:[%s4995_s12 + $0x248] sm:$0xff]  ;;  %v466_v30 = vld [vmem:[%s4995_s12 + $0x340] sm:$0xff]  ;;  %v453_v35 = vld [vmem:[%s4995_s12 + $0x2d8] sm:$0xff] }
  0x41   : > { %1281 = vmatmul.mubr.f32.vlgmr.msra.gmra.mrb[0].mxu1 %v315_v51  ;;  %4095 = vmatpush3.bf16.msra.mxu0 %v4094_v52  ;;  %v467_v33 = vld [vmem:[%s4995_s12 + $0x348] sm:$0xff]  ;;  %v484_v36 = vld [vmem:[%s4995_s12 + $0x3d0] sm:$0xff]  ;;  %v485_v37 = vld [vmem:[%s4995_s12 + $0x3d8] sm:$0xff]  ;;  %v4110_v38 = vpack.c.bf16 %v435_v29, %v434_v26  ;;  %v4112_v40 = vpack.c.bf16 %v453_v35, %v452_v34 }
  0x42   : > { %4127 = vmatpush3.bf16.msra.mxu1 %v4126_v53  ;;  %4097 = vmatprep.subr.bf16.mxu0 %v4096_v54  ;;  %v4142_v39 = vpack.c.bf16 %v467_v33, %v466_v30  ;;  %v436_v41 = vld [vmem:[%s4995_s12 + $0x250] sm:$0xff]  ;;  %v437_v42 = vld [vmem:[%s4995_s12 + $0x258] sm:$0xff]  ;;  %v4144_v44 = vpack.c.bf16 %v485_v37, %v484_v36  ;;  %v454_v46 = vld [vmem:[%s4995_s12 + $0x2e0] sm:$0xff] }
  0x43   : > { %4129 = vmatprep.subr.bf16.mxu1 %v4128_v58  ;;  %1350 = vmatprep.mubr.f32.mxu0 %v318_v24  ;;  %v468_v43 = vld [vmem:[%s4995_s12 + $0x350] sm:$0xff]  ;;  %v469_v45 = vld [vmem:[%s4995_s12 + $0x358] sm:$0xff]  ;;  %v455_v47 = vld [vmem:[%s4995_s12 + $0x2e8] sm:$0xff]  ;;  %v4114_v50 = vpack.c.bf16 %v437_v42, %v436_v41 }
  0x44   : > { %1420 = vmatprep.mubr.f32.mxu1 %v320_v31  ;;  %v486_v48 = vld [vmem:[%s4995_s12 + $0x3e0] sm:$0xff]  ;;  %v487_v49 = vld [vmem:[%s4995_s12 + $0x3e8] sm:$0xff]  ;;  %v4146_v51 = vpack.c.bf16 %v469_v45, %v468_v43  ;;  %v4116_v52 = vpack.c.bf16 %v455_v47, %v454_v46  ;;  %v456_v58 = vld [vmem:[%s4995_s12 + $0x2f0] sm:$0xff] }
  0x45   : > { %4099 = vmatpush3.bf16.msra.mxu0 %v4098_v0  ;;  %v438_v53 = vld [vmem:[%s4995_s12 + $0x260] sm:$0xff]  ;;  %v439_v54 = vld [vmem:[%s4995_s12 + $0x268] sm:$0xff]  ;;  %v4148_v56 = vpack.c.bf16 %v487_v49, %v486_v48  ;;  %v457_v59 = vld [vmem:[%s4995_s12 + $0x2f8] sm:$0xff] }
  0x46   : > { %4131 = vmatpush3.bf16.msra.mxu1 %v4130_v1  ;;  %4101 = vmatprep.subr.bf16.mxu0 %v4100_v2  ;;  %v470_v55 = vld [vmem:[%s4995_s12 + $0x360] sm:$0xff]  ;;  %v471_v57 = vld [vmem:[%s4995_s12 + $0x368] sm:$0xff]  ;;  %v488_v60 = vld [vmem:[%s4995_s12 + $0x3f0] sm:$0xff]  ;;  %v4118_v62 = vpack.c.bf16 %v439_v54, %v438_v53  ;;  %v4120_v0 = vpack.c.bf16 %v457_v59, %v456_v58 }
  0x47   : > { %4133 = vmatprep.subr.bf16.mxu1 %v4132_v6  ;;  %v489_v61 = vld [vmem:[%s4995_s12 + $0x3f8] sm:$0xff]  ;;  %v4150_v63 = vpack.c.bf16 %v471_v57, %v470_v55  ;;  %v440_v1 = vld [vmem:[%s4995_s12 + $0x270] sm:$0xff]  ;;  %v506_v6 = vld [vmem:[%s4995_s12 + $0x480] sm:$0xff] }
  0x48   : > { %v441_v2 = vld [vmem:[%s4995_s12 + $0x278] sm:$0xff]  ;;  %v472_v3 = vld [vmem:[%s4995_s12 + $0x370] sm:$0xff]  ;;  %v4152_v4 = vpack.c.bf16 %v489_v61, %v488_v60  ;;  %v507_v7 = vld [vmem:[%s4995_s12 + $0x488] sm:$0xff] }
  0x49   : > { %4103 = vmatpush3.bf16.msra.mxu0 %v4102_v12  ;;  %v473_v5 = vld [vmem:[%s4995_s12 + $0x378] sm:$0xff]  ;;  %v538_v8 = vld [vmem:[%s4995_s12 + $0x580] sm:$0xff]  ;;  %v539_v9 = vld [vmem:[%s4995_s12 + $0x588] sm:$0xff]  ;;  %v4122_v10 = vpack.c.bf16 %v441_v2, %v440_v1  ;;  %v4156_v12 = vpack.c.bf16 %v507_v7, %v506_v6 }
  0x4a   : > { %4135 = vmatpush3.bf16.msra.mxu1 %v4134_v13  ;;  %4105 = vmatprep.subr.bf16.mxu0 %v4104_v14  ;;  %v4154_v11 = vpack.c.bf16 %v473_v5, %v472_v3  ;;  %v490_v13 = vld [vmem:[%s4995_s12 + $0x400] sm:$0xff]  ;;  %v491_v14 = vld [vmem:[%s4995_s12 + $0x408] sm:$0xff]  ;;  %v4188_v16 = vpack.c.bf16 %v539_v9, %v538_v8  ;;  %v509_v19 = vld [vmem:[%s4995_s12 + $0x498] sm:$0xff] }
  0x4b   : > { %4137 = vmatprep.subr.bf16.mxu1 %v4136_v18  ;;  %v522_v15 = vld [vmem:[%s4995_s12 + $0x500] sm:$0xff]  ;;  %v523_v17 = vld [vmem:[%s4995_s12 + $0x508] sm:$0xff]  ;;  %v508_v18 = vld [vmem:[%s4995_s12 + $0x490] sm:$0xff]  ;;  %v4158_v23 = vpack.c.bf16 %v491_v14, %v490_v13 }
  0x4c   : > { %v540_v20 = vld [vmem:[%s4995_s12 + $0x590] sm:$0xff]  ;;  %v541_v21 = vld [vmem:[%s4995_s12 + $0x598] sm:$0xff]  ;;  %v317_v22 = vld [vmem:[%s4990_s8 + $0x20] sm:$0xff]  ;;  %v4160_v26 = vpack.c.bf16 %v509_v19, %v508_v18 }
  0x4d   : > { %4107 = vmatpush3.bf16.msra.mxu0 %v4106_v25  ;;  %v319_v24 = vld [vmem:[%s4990_s8 + $0x30] sm:$0xff]  ;;  %v4190_v25 = vpack.c.bf16 %v523_v17, %v522_v15  ;;  %v4192_v30 = vpack.c.bf16 %v541_v21, %v540_v20  ;;  %v525_v31 = vld [vmem:[%s4995_s12 + $0x518] sm:$0xff]  ;;  %v511_v33 = vld [vmem:[%s4995_s12 + $0x4a8] sm:$0xff] }
  0x4e   : > { %4139 = vmatpush3.bf16.msra.mxu1 %v4138_v27  ;;  %4109 = vmatprep.subr.bf16.mxu0 %v4108_v28  ;;  %v492_v27 = vld [vmem:[%s4995_s12 + $0x410] sm:$0xff]  ;;  %v493_v28 = vld [vmem:[%s4995_s12 + $0x418] sm:$0xff]  ;;  %v542_v34 = vld [vmem:[%s4995_s12 + $0x5a0] sm:$0xff] }
  0x4f   : > { %4141 = vmatprep.subr.bf16.mxu1 %v4140_v32  ;;  %v524_v29 = vld [vmem:[%s4995_s12 + $0x510] sm:$0xff]  ;;  %v510_v32 = vld [vmem:[%s4995_s12 + $0x4a0] sm:$0xff]  ;;  %v543_v35 = vld [vmem:[%s4995_s12 + $0x5a8] sm:$0xff]  ;;  %v4162_v37 = vpack.c.bf16 %v493_v28, %v492_v27 }
  0x50   : > { %v322_v36 = vld [vmem:[%s4990_s8 + $0x48] sm:$0xff]  ;;  %v494_v41 = vld [vmem:[%s4995_s12 + $0x420] sm:$0xff]  ;;  %v512_v46 = vld [vmem:[%s4995_s12 + $0x4b0] sm:$0xff] }
  0x51   : > { %4111 = vmatpush3.bf16.msra.mxu0 %v4110_v38  ;;  %v324_v38 = vld [vmem:[%s4990_s8 + $0x58] sm:$0xff]  ;;  %v495_v42 = vld [vmem:[%s4995_s12 + $0x428] sm:$0xff]  ;;  %v526_v43 = vld [vmem:[%s4995_s12 + $0x520] sm:$0xff] }
  0x52   : > { %4143 = vmatpush3.bf16.msra.mxu1 %v4142_v39  ;;  %4113 = vmatprep.subr.bf16.mxu0 %v4112_v40  ;;  %v4194_v39 = vpack.c.bf16 %v525_v31, %v524_v29  ;;  %v4164_v40 = vpack.c.bf16 %v511_v33, %v510_v32  ;;  %v527_v45 = vld [vmem:[%s4995_s12 + $0x528] sm:$0xff]  ;;  %v513_v47 = vld [vmem:[%s4995_s12 + $0x4b8] sm:$0xff]  ;;  %v544_v48 = vld [vmem:[%s4995_s12 + $0x5b0] sm:$0xff] }
  0x53   : > { %4145 = vmatprep.subr.bf16.mxu1 %v4144_v44  ;;  %v4196_v44 = vpack.c.bf16 %v543_v35, %v542_v34  ;;  %v545_v49 = vld [vmem:[%s4995_s12 + $0x5b8] sm:$0xff]  ;;  %v496_v53 = vld [vmem:[%s4995_s12 + $0x430] sm:$0xff]  ;;  %v514_v58 = vld [vmem:[%s4995_s12 + $0x4c0] sm:$0xff] }
  0x54   : > { %v497_v54 = vld [vmem:[%s4995_s12 + $0x438] sm:$0xff]  ;;  %v528_v55 = vld [vmem:[%s4995_s12 + $0x530] sm:$0xff]  ;;  %v515_v59 = vld [vmem:[%s4995_s12 + $0x4c8] sm:$0xff] }
  0x55   : > { %4115 = vmatpush3.bf16.msra.mxu0 %v4114_v50  ;;  %v4166_v50 = vpack.c.bf16 %v495_v42, %v494_v41  ;;  %v529_v57 = vld [vmem:[%s4995_s12 + $0x538] sm:$0xff]  ;;  %v546_v60 = vld [vmem:[%s4995_s12 + $0x5c0] sm:$0xff]  ;;  %v547_v61 = vld [vmem:[%s4995_s12 + $0x5c8] sm:$0xff] }
  0x56   : > { %4147 = vmatpush3.bf16.msra.mxu1 %v4146_v51  ;;  %4117 = vmatprep.subr.bf16.mxu0 %v4116_v52  ;;  %v4198_v51 = vpack.c.bf16 %v527_v45, %v526_v43  ;;  %v4168_v52 = vpack.c.bf16 %v513_v47, %v512_v46  ;;  %v498_v1 = vld [vmem:[%s4995_s12 + $0x440] sm:$0xff]  ;;  %v499_v2 = vld [vmem:[%s4995_s12 + $0x448] sm:$0xff]  ;;  %v516_v6 = vld [vmem:[%s4995_s12 + $0x4d0] sm:$0xff] }
  0x57   : > { %4149 = vmatprep.subr.bf16.mxu1 %v4148_v56  ;;  %v4200_v56 = vpack.c.bf16 %v545_v49, %v544_v48  ;;  %v530_v3 = vld [vmem:[%s4995_s12 + $0x540] sm:$0xff]  ;;  %v531_v5 = vld [vmem:[%s4995_s12 + $0x548] sm:$0xff]  ;;  %v517_v7 = vld [vmem:[%s4995_s12 + $0x4d8] sm:$0xff] }
  0x58   : > { %v548_v8 = vld [vmem:[%s4995_s12 + $0x5d0] sm:$0xff]  ;;  %v549_v9 = vld [vmem:[%s4995_s12 + $0x5d8] sm:$0xff]  ;;  %v518_v18 = vld [vmem:[%s4995_s12 + $0x4e0] sm:$0xff] }
  0x59   : > { %4119 = vmatpush3.bf16.msra.mxu0 %v4118_v62  ;;  %v4170_v62 = vpack.c.bf16 %v497_v54, %v496_v53  ;;  %v500_v13 = vld [vmem:[%s4995_s12 + $0x450] sm:$0xff]  ;;  %v501_v14 = vld [vmem:[%s4995_s12 + $0x458] sm:$0xff]  ;;  %v519_v19 = vld [vmem:[%s4995_s12 + $0x4e8] sm:$0xff] }
  0x5a   : > { %4151 = vmatpush3.bf16.msra.mxu1 %v4150_v63  ;;  %4121 = vmatprep.subr.bf16.mxu0 %v4120_v0  ;;  %v4202_v63 = vpack.c.bf16 %v529_v57, %v528_v55  ;;  %v4172_v0 = vpack.c.bf16 %v515_v59, %v514_v58  ;;  %v532_v15 = vld [vmem:[%s4995_s12 + $0x550] sm:$0xff]  ;;  %v533_v17 = vld [vmem:[%s4995_s12 + $0x558] sm:$0xff]  ;;  %v550_v20 = vld [vmem:[%s4995_s12 + $0x5e0] sm:$0xff] }
  0x5b   : > { %4153 = vmatprep.subr.bf16.mxu1 %v4152_v4  ;;  %v4204_v4 = vpack.c.bf16 %v547_v61, %v546_v60  ;;  %v551_v21 = vld [vmem:[%s4995_s12 + $0x5e8] sm:$0xff]  ;;  %v534_v27 = vld [vmem:[%s4995_s12 + $0x560] sm:$0xff]  ;;  %v521_v31 = vld [vmem:[%s4995_s12 + $0x4f8] sm:$0xff] }
  0x5c   : > { %v4212_v28 = vpack.c.bf16 %v551_v21, %v550_v20  ;;  %v535_v29 = vld [vmem:[%s4995_s12 + $0x568] sm:$0xff]  ;;  %v552_v32 = vld [vmem:[%s4995_s12 + $0x5f0] sm:$0xff]  ;;  %v553_v33 = vld [vmem:[%s4995_s12 + $0x5f8] sm:$0xff] }
  0x5d   : > { %4123 = vmatpush3.bf16.msra.mxu0 %v4122_v10  ;;  %v4174_v10 = vpack.c.bf16 %v499_v2, %v498_v1  ;;  %v4214_v35 = vpack.c.bf16 %v535_v29, %v534_v27  ;;  %v537_v41 = vld [vmem:[%s4995_s12 + $0x578] sm:$0xff]  ;;  %v570_v42 = vld [vmem:[%s4995_s12 + $0x680] sm:$0xff]  ;;  %v571_v43 = vld [vmem:[%s4995_s12 + $0x688] sm:$0xff] }
  0x5e   : > { %4155 = vmatpush3.bf16.msra.mxu1 %v4154_v11  ;;  %4157 = vmatprep.subr.bf16.mxu0 %v4156_v12  ;;  %v4206_v11 = vpack.c.bf16 %v531_v5, %v530_v3  ;;  %v4176_v12 = vpack.c.bf16 %v517_v7, %v516_v6  ;;  %v603_v45 = vld [vmem:[%s4995_s12 + $0x788] sm:$0xff]  ;;  %v4220_v48 = vpack.c.bf16 %v571_v43, %v570_v42  ;;  %v554_v49 = vld [vmem:[%s4995_s12 + $0x600] sm:$0xff]  ;;  %v572_v54 = vld [vmem:[%s4995_s12 + $0x690] sm:$0xff] }
  0x5f   : > { %4189 = vmatprep.subr.bf16.mxu1 %v4188_v16  ;;  %v4208_v16 = vpack.c.bf16 %v549_v9, %v548_v8  ;;  %v587_v53 = vld [vmem:[%s4995_s12 + $0x708] sm:$0xff]  ;;  %v573_v55 = vld [vmem:[%s4995_s12 + $0x698] sm:$0xff]  ;;  %v321_v58 = vld [vmem:[%s4990_s8 + $0x40] sm:$0xff] }
  0x60   : > { %1351 = vmatmul.mubr.f32.vlgmr.msra.gmra.mrb[2].mxu0 %v317_v22  ;;  %v4178_v22 = vpack.c.bf16 %v501_v14, %v500_v13  ;;  %v605_v57 = vld [vmem:[%s4995_s12 + $0x798] sm:$0xff]  ;;  %v323_v60 = vld [vmem:[%s4990_s8 + $0x50] sm:$0xff]  ;;  %v575_v5 = vld [vmem:[%s4995_s12 + $0x6a8] sm:$0xff] }
  0x61   : > { %4159 = vmatpush3.bf16.msra.mxu0 %v4158_v23  ;;  %1421 = vmatmul.mubr.f32.vlgmr.msra.gmra.mrb[2].mxu1 %v319_v24  ;;  %v4210_v23 = vpack.c.bf16 %v533_v17, %v532_v15  ;;  %v4180_v24 = vpack.c.bf16 %v519_v19, %v518_v18  ;;  %v588_v1 = vld [vmem:[%s4995_s12 + $0x710] sm:$0xff]  ;;  %v589_v3 = vld [vmem:[%s4995_s12 + $0x718] sm:$0xff]  ;;  %v606_v6 = vld [vmem:[%s4995_s12 + $0x7a0] sm:$0xff] }
  0x62   : > { %4191 = vmatpush3.bf16.msra.mxu1 %v4190_v25  ;;  %4161 = vmatprep.subr.bf16.mxu0 %v4160_v26  ;;  %v502_v25 = vld [vmem:[%s4995_s12 + $0x460] sm:$0xff]  ;;  %v503_v26 = vld [vmem:[%s4995_s12 + $0x468] sm:$0xff]  ;;  %v576_v18 = vld [vmem:[%s4995_s12 + $0x6b0] sm:$0xff] }
  0x63   : > { %4193 = vmatprep.subr.bf16.mxu1 %v4192_v30  ;;  %1490 = vmatprep.mubr.f32.mxu0 %v322_v36  ;;  %v520_v30 = vld [vmem:[%s4995_s12 + $0x4f0] sm:$0xff]  ;;  %v4182_v34 = vpack.c.bf16 %v503_v26, %v502_v25  ;;  %v607_v7 = vld [vmem:[%s4995_s12 + $0x7a8] sm:$0xff]  ;;  %v558_v13 = vld [vmem:[%s4995_s12 + $0x620] sm:$0xff] }
  0x64   : > { %1560 = vmatprep.mubr.f32.mxu1 %v324_v38  ;;  %v4184_v36 = vpack.c.bf16 %v521_v31, %v520_v30  ;;  %v505_v38 = vld [vmem:[%s4995_s12 + $0x478] sm:$0xff]  ;;  %v326_v8 = vld [vmem:[%s4990_s8 + $0x68] sm:$0xff]  ;;  %v590_v15 = vld [vmem:[%s4995_s12 + $0x720] sm:$0xff] }
  0x65   : > { %4163 = vmatpush3.bf16.msra.mxu0 %v4162_v37  ;;  %v504_v37 = vld [vmem:[%s4995_s12 + $0x470] sm:$0xff]  ;;  %v559_v14 = vld [vmem:[%s4995_s12 + $0x628] sm:$0xff]  ;;  %v577_v19 = vld [vmem:[%s4995_s12 + $0x6b8] sm:$0xff] }
  0x66   : > { %4195 = vmatpush3.bf16.msra.mxu1 %v4194_v39  ;;  %4165 = vmatprep.subr.bf16.mxu0 %v4164_v40  ;;  %v536_v39 = vld [vmem:[%s4995_s12 + $0x570] sm:$0xff]  ;;  %v4216_v40 = vpack.c.bf16 %v553_v33, %v552_v32  ;;  %v4186_v46 = vpack.c.bf16 %v505_v38, %v504_v37  ;;  %v591_v17 = vld [vmem:[%s4995_s12 + $0x728] sm:$0xff]  ;;  %v609_v21 = vld [vmem:[%s4995_s12 + $0x7b8] sm:$0xff] }
  0x67   : > { %4197 = vmatprep.subr.bf16.mxu1 %v4196_v44  ;;  %v602_v44 = vld [vmem:[%s4995_s12 + $0x780] sm:$0xff]  ;;  %v4218_v47 = vpack.c.bf16 %v537_v41, %v536_v39  ;;  %v608_v20 = vld [vmem:[%s4995_s12 + $0x7b0] sm:$0xff]  ;;  %v561_v26 = vld [vmem:[%s4995_s12 + $0x638] sm:$0xff] }
  0x68   : > { %v560_v25 = vld [vmem:[%s4995_s12 + $0x630] sm:$0xff]  ;;  %v593_v29 = vld [vmem:[%s4995_s12 + $0x738] sm:$0xff]  ;;  %v578_v30 = vld [vmem:[%s4995_s12 + $0x6c0] sm:$0xff] }
  0x69   : > { %4167 = vmatpush3.bf16.msra.mxu0 %v4166_v50  ;;  %v555_v50 = vld [vmem:[%s4995_s12 + $0x608] sm:$0xff]  ;;  %v592_v27 = vld [vmem:[%s4995_s12 + $0x730] sm:$0xff]  ;;  %v610_v32 = vld [vmem:[%s4995_s12 + $0x7c0] sm:$0xff] }
  0x6a   : > { %4199 = vmatpush3.bf16.msra.mxu1 %v4198_v51  ;;  %4169 = vmatprep.subr.bf16.mxu0 %v4168_v52  ;;  %v586_v51 = vld [vmem:[%s4995_s12 + $0x700] sm:$0xff]  ;;  %v4252_v52 = vpack.c.bf16 %v603_v45, %v602_v44  ;;  %v4222_v59 = vpack.c.bf16 %v555_v50, %v554_v49  ;;  %v579_v31 = vld [vmem:[%s4995_s12 + $0x6c8] sm:$0xff]  ;;  %v580_v42 = vld [vmem:[%s4995_s12 + $0x6d0] sm:$0xff] }
  0x6b   : > { %4201 = vmatprep.subr.bf16.mxu1 %v4200_v56  ;;  %v604_v56 = vld [vmem:[%s4995_s12 + $0x790] sm:$0xff]  ;;  %v4254_v61 = vpack.c.bf16 %v587_v53, %v586_v51  ;;  %v611_v33 = vld [vmem:[%s4995_s12 + $0x7c8] sm:$0xff]  ;;  %v562_v37 = vld [vmem:[%s4995_s12 + $0x640] sm:$0xff] }
  0x6c   : > { %v4256_v2 = vpack.c.bf16 %v605_v57, %v604_v56  ;;  %v563_v38 = vld [vmem:[%s4995_s12 + $0x648] sm:$0xff]  ;;  %v594_v39 = vld [vmem:[%s4995_s12 + $0x740] sm:$0xff]  ;;  %v581_v43 = vld [vmem:[%s4995_s12 + $0x6d8] sm:$0xff] }
  0x6d   : > { %4171 = vmatpush3.bf16.msra.mxu0 %v4170_v62  ;;  %v4224_v62 = vpack.c.bf16 %v573_v55, %v572_v54  ;;  %v595_v41 = vld [vmem:[%s4995_s12 + $0x748] sm:$0xff]  ;;  %v612_v44 = vld [vmem:[%s4995_s12 + $0x7d0] sm:$0xff]  ;;  %v613_v45 = vld [vmem:[%s4995_s12 + $0x7d8] sm:$0xff] }
  0x6e   : > { %4203 = vmatpush3.bf16.msra.mxu1 %v4202_v63  ;;  %4173 = vmatprep.subr.bf16.mxu0 %v4172_v0  ;;  %v556_v63 = vld [vmem:[%s4995_s12 + $0x610] sm:$0xff]  ;;  %v557_v0 = vld [vmem:[%s4995_s12 + $0x618] sm:$0xff]  ;;  %v582_v54 = vld [vmem:[%s4995_s12 + $0x6e0] sm:$0xff] }
  0x6f   : > { %4205 = vmatprep.subr.bf16.mxu1 %v4204_v4  ;;  %v574_v4 = vld [vmem:[%s4995_s12 + $0x6a0] sm:$0xff]  ;;  %v4226_v9 = vpack.c.bf16 %v557_v0, %v556_v63  ;;  %v564_v49 = vld [vmem:[%s4995_s12 + $0x650] sm:$0xff]  ;;  %v565_v50 = vld [vmem:[%s4995_s12 + $0x658] sm:$0xff] }
  0x70   : > { %v596_v51 = vld [vmem:[%s4995_s12 + $0x750] sm:$0xff]  ;;  %v597_v53 = vld [vmem:[%s4995_s12 + $0x758] sm:$0xff]  ;;  %v583_v55 = vld [vmem:[%s4995_s12 + $0x6e8] sm:$0xff] }
  0x71   : > { %4175 = vmatpush3.bf16.msra.mxu0 %v4174_v10  ;;  %v328_v10 = vld [vmem:[%s4990_s8 + $0x78] sm:$0xff]  ;;  %v614_v56 = vld [vmem:[%s4995_s12 + $0x7e0] sm:$0xff]  ;;  %v615_v57 = vld [vmem:[%s4995_s12 + $0x7e8] sm:$0xff] }
  0x72   : > { %4207 = vmatpush3.bf16.msra.mxu1 %v4206_v11  ;;  %4177 = vmatprep.subr.bf16.mxu0 %v4176_v12  ;;  %v4258_v11 = vpack.c.bf16 %v589_v3, %v588_v1  ;;  %v4228_v12 = vpack.c.bf16 %v575_v5, %v574_v4  ;;  %v598_v63 = vld [vmem:[%s4995_s12 + $0x760] sm:$0xff]  ;;  %v4276_v0 = vpack.c.bf16 %v615_v57, %v614_v56  ;;  %v599_v1 = vld [vmem:[%s4995_s12 + $0x768] sm:$0xff]  ;;  %v585_v3 = vld [vmem:[%s4995_s12 + $0x6f8] sm:$0xff] }
  0x73   : > { %4209 = vmatprep.subr.bf16.mxu1 %v4208_v16  ;;  %v4260_v16 = vpack.c.bf16 %v607_v7, %v606_v6  ;;  %v616_v4 = vld [vmem:[%s4995_s12 + $0x7f0] sm:$0xff]  ;;  %v617_v5 = vld [vmem:[%s4995_s12 + $0x7f8] sm:$0xff]  ;;  %v4278_v7 = vpack.c.bf16 %v599_v1, %v598_v63 }
  0x74   : > { %v672_v56 = vld [vmem:[%s4995_s12 + $0x9b0] sm:$0xff]  ;;  %v673_v57 = vld [vmem:[%s4995_s12 + $0x9b8] sm:$0xff] }
  0x75   : > { %4179 = vmatpush3.bf16.msra.mxu0 %v4178_v22  ;;  %v4230_v22 = vpack.c.bf16 %v559_v14, %v558_v13  ;;  %v601_v13 = vld [vmem:[%s4995_s12 + $0x778] sm:$0xff]  ;;  %v634_v14 = vld [vmem:[%s4995_s12 + $0x880] sm:$0xff]  ;;  %v656_v63 = vld [vmem:[%s4995_s12 + $0x930] sm:$0xff] }
  0x76   : > { %4211 = vmatpush3.bf16.msra.mxu1 %v4210_v23  ;;  %4181 = vmatprep.subr.bf16.mxu0 %v4180_v24  ;;  %v4262_v23 = vpack.c.bf16 %v591_v17, %v590_v15  ;;  %v4232_v24 = vpack.c.bf16 %v577_v19, %v576_v18  ;;  %v635_v15 = vld [vmem:[%s4995_s12 + $0x888] sm:$0xff]  ;;  %v657_v1 = vld [vmem:[%s4995_s12 + $0x938] sm:$0xff] }
  0x77   : > { %4213 = vmatprep.subr.bf16.mxu1 %v4212_v28  ;;  %v4264_v28 = vpack.c.bf16 %v609_v21, %v608_v20  ;;  %v667_v17 = vld [vmem:[%s4995_s12 + $0x988] sm:$0xff]  ;;  %v4284_v20 = vpack.c.bf16 %v635_v15, %v634_v14  ;;  %v618_v21 = vld [vmem:[%s4995_s12 + $0x800] sm:$0xff]  ;;  %v644_v14 = vld [vmem:[%s4995_s12 + $0x8d0] sm:$0xff] }
  0x78   : > { %v645_v15 = vld [vmem:[%s4995_s12 + $0x8d8] sm:$0xff] }
  0x79   : > { %4183 = vmatpush3.bf16.msra.mxu0 %v4182_v34  ;;  %v4234_v34 = vpack.c.bf16 %v561_v26, %v560_v25  ;;  %v651_v25 = vld [vmem:[%s4995_s12 + $0x908] sm:$0xff]  ;;  %v636_v26 = vld [vmem:[%s4995_s12 + $0x890] sm:$0xff] }
  0x7a   : > { %4215 = vmatpush3.bf16.msra.mxu1 %v4214_v35  ;;  %4185 = vmatprep.subr.bf16.mxu0 %v4184_v36  ;;  %v4266_v35 = vpack.c.bf16 %v593_v29, %v592_v27  ;;  %v4236_v36 = vpack.c.bf16 %v579_v31, %v578_v30  ;;  %v637_v27 = vld [vmem:[%s4995_s12 + $0x898] sm:$0xff]  ;;  %v325_v30 = vld [vmem:[%s4990_s8 + $0x60] sm:$0xff] }
  0x7b   : > { %4217 = vmatprep.subr.bf16.mxu1 %v4216_v40  ;;  %v4268_v40 = vpack.c.bf16 %v611_v33, %v610_v32  ;;  %v669_v29 = vld [vmem:[%s4995_s12 + $0x998] sm:$0xff]  ;;  %v327_v32 = vld [vmem:[%s4990_s8 + $0x70] sm:$0xff] }
  0x7d   : > { %4187 = vmatpush3.bf16.msra.mxu0 %v4186_v46  ;;  %v4238_v46 = vpack.c.bf16 %v563_v38, %v562_v37  ;;  %v652_v37 = vld [vmem:[%s4995_s12 + $0x910] sm:$0xff] }
  0x7e   : > { %4219 = vmatpush3.bf16.msra.mxu1 %v4218_v47  ;;  %4221 = vmatprep.subr.bf16.mxu0 %v4220_v48  ;;  %v4270_v47 = vpack.c.bf16 %v595_v41, %v594_v39  ;;  %v4240_v48 = vpack.c.bf16 %v581_v43, %v580_v42  ;;  %v653_v39 = vld [vmem:[%s4995_s12 + $0x918] sm:$0xff]  ;;  %v639_v41 = vld [vmem:[%s4995_s12 + $0x8a8] sm:$0xff]  ;;  %v670_v42 = vld [vmem:[%s4995_s12 + $0x9a0] sm:$0xff] }
  0x7f   : > { %4253 = vmatprep.subr.bf16.mxu1 %v4252_v52  ;;  %v4272_v52 = vpack.c.bf16 %v613_v45, %v612_v44  ;;  %v671_v43 = vld [vmem:[%s4995_s12 + $0x9a8] sm:$0xff] }
  0x80   : > { %1491 = vmatmul.mubr.f32.vlgmr.msra.gmra.mrb[4].mxu0 %v321_v58  ;;  %v4242_v58 = vpack.c.bf16 %v565_v50, %v564_v49  ;;  %v330_v44 = vld [vmem:[%s4990_s8 + $0x88] sm:$0xff]  ;;  %v622_v49 = vld [vmem:[%s4995_s12 + $0x820] sm:$0xff] }
  0x81   : > { %4223 = vmatpush3.bf16.msra.mxu0 %v4222_v59  ;;  %1561 = vmatmul.mubr.f32.vlgmr.msra.gmra.mrb[4].mxu1 %v323_v60  ;;  %v4274_v59 = vpack.c.bf16 %v597_v53, %v596_v51  ;;  %v4244_v60 = vpack.c.bf16 %v583_v55, %v582_v54  ;;  %v623_v50 = vld [vmem:[%s4995_s12 + $0x828] sm:$0xff]  ;;  %v654_v51 = vld [vmem:[%s4995_s12 + $0x920] sm:$0xff]  ;;  %v640_v54 = vld [vmem:[%s4995_s12 + $0x8b0] sm:$0xff] }
  0x82   : > { %4255 = vmatpush3.bf16.msra.mxu1 %v4254_v61  ;;  %4225 = vmatprep.subr.bf16.mxu0 %v4224_v62  ;;  %v566_v61 = vld [vmem:[%s4995_s12 + $0x660] sm:$0xff]  ;;  %v567_v62 = vld [vmem:[%s4995_s12 + $0x668] sm:$0xff]  ;;  %v641_v55 = vld [vmem:[%s4995_s12 + $0x8b8] sm:$0xff] }
  0x83   : > { %4257 = vmatprep.subr.bf16.mxu1 %v4256_v2  ;;  %1630 = vmatprep.mubr.f32.mxu0 %v326_v8  ;;  %v584_v2 = vld [vmem:[%s4995_s12 + $0x6f0] sm:$0xff]  ;;  %v4246_v6 = vpack.c.bf16 %v567_v62, %v566_v61  ;;  %v655_v53 = vld [vmem:[%s4995_s12 + $0x928] sm:$0xff]  ;;  %v625_v62 = vld [vmem:[%s4995_s12 + $0x838] sm:$0xff] }
  0x84   : > { %1700 = vmatprep.mubr.f32.mxu1 %v328_v10  ;;  %v4248_v8 = vpack.c.bf16 %v585_v3, %v584_v2  ;;  %v569_v10 = vld [vmem:[%s4995_s12 + $0x678] sm:$0xff]  ;;  %v624_v61 = vld [vmem:[%s4995_s12 + $0x830] sm:$0xff]  ;;  %v642_v2 = vld [vmem:[%s4995_s12 + $0x8c0] sm:$0xff] }
  0x85   : > { %4227 = vmatpush3.bf16.msra.mxu0 %v4226_v9  ;;  %v568_v9 = vld [vmem:[%s4995_s12 + $0x670] sm:$0xff]  ;;  %v643_v3 = vld [vmem:[%s4995_s12 + $0x8c8] sm:$0xff] }
  0x86   : > { %4259 = vmatpush3.bf16.msra.mxu1 %v4258_v11  ;;  %4229 = vmatprep.subr.bf16.mxu0 %v4228_v12  ;;  %v600_v11 = vld [vmem:[%s4995_s12 + $0x770] sm:$0xff]  ;;  %v4280_v12 = vpack.c.bf16 %v617_v5, %v616_v4  ;;  %v4250_v18 = vpack.c.bf16 %v569_v10, %v568_v9  ;;  %v674_v4 = vld [vmem:[%s4995_s12 + $0x9c0] sm:$0xff]  ;;  %v675_v5 = vld [vmem:[%s4995_s12 + $0x9c8] sm:$0xff] }
  0x87   : > { %4261 = vmatprep.subr.bf16.mxu1 %v4260_v16  ;;  %v666_v16 = vld [vmem:[%s4995_s12 + $0x980] sm:$0xff]  ;;  %v4282_v19 = vpack.c.bf16 %v601_v13, %v600_v11  ;;  %v627_v10 = vld [vmem:[%s4995_s12 + $0x848] sm:$0xff] }
  0x88   : > { %v626_v9 = vld [vmem:[%s4995_s12 + $0x840] sm:$0xff]  ;;  %v659_v13 = vld [vmem:[%s4995_s12 + $0x948] sm:$0xff] }
  0x89   : > { %4231 = vmatpush3.bf16.msra.mxu0 %v4230_v22  ;;  %v619_v22 = vld [vmem:[%s4995_s12 + $0x808] sm:$0xff]  ;;  %v658_v11 = vld [vmem:[%s4995_s12 + $0x940] sm:$0xff] }
  0x8a   : > { %4263 = vmatpush3.bf16.msra.mxu1 %v4262_v23  ;;  %4233 = vmatprep.subr.bf16.mxu0 %v4232_v24  ;;  %v650_v23 = vld [vmem:[%s4995_s12 + $0x900] sm:$0xff]  ;;  %v4316_v24 = vpack.c.bf16 %v667_v17, %v666_v16  ;;  %v4286_v31 = vpack.c.bf16 %v619_v22, %v618_v21  ;;  %v676_v16 = vld [vmem:[%s4995_s12 + $0x9d0] sm:$0xff]  ;;  %v677_v17 = vld [vmem:[%s4995_s12 + $0x9d8] sm:$0xff] }
  0x8b   : > { %4265 = vmatprep.subr.bf16.mxu1 %v4264_v28  ;;  %v668_v28 = vld [vmem:[%s4995_s12 + $0x990] sm:$0xff]  ;;  %v4318_v33 = vpack.c.bf16 %v651_v25, %v650_v23  ;;  %v629_v22 = vld [vmem:[%s4995_s12 + $0x858] sm:$0xff] }
  0x8c   : > { %v4320_v38 = vpack.c.bf16 %v669_v29, %v668_v28  ;;  %v628_v21 = vld [vmem:[%s4995_s12 + $0x850] sm:$0xff]  ;;  %v661_v25 = vld [vmem:[%s4995_s12 + $0x958] sm:$0xff]  ;;  %v678_v28 = vld [vmem:[%s4995_s12 + $0x9e0] sm:$0xff] }
  0x8d   : > { %4235 = vmatpush3.bf16.msra.mxu0 %v4234_v34  ;;  %v4288_v34 = vpack.c.bf16 %v637_v27, %v636_v26  ;;  %v660_v23 = vld [vmem:[%s4995_s12 + $0x950] sm:$0xff]  ;;  %v646_v26 = vld [vmem:[%s4995_s12 + $0x8e0] sm:$0xff]  ;;  %v647_v27 = vld [vmem:[%s4995_s12 + $0x8e8] sm:$0xff] }
  0x8e   : > { %4267 = vmatpush3.bf16.msra.mxu1 %v4266_v35  ;;  %4237 = vmatprep.subr.bf16.mxu0 %v4236_v36  ;;  %v620_v35 = vld [vmem:[%s4995_s12 + $0x810] sm:$0xff]  ;;  %v621_v36 = vld [vmem:[%s4995_s12 + $0x818] sm:$0xff]  ;;  %v679_v29 = vld [vmem:[%s4995_s12 + $0x9e8] sm:$0xff] }
  0x8f   : > { %4269 = vmatprep.subr.bf16.mxu1 %v4268_v40  ;;  %v638_v40 = vld [vmem:[%s4995_s12 + $0x8a0] sm:$0xff]  ;;  %v4290_v45 = vpack.c.bf16 %v621_v36, %v620_v35  ;;  %v4340_v36 = vpack.c.bf16 %v679_v29, %v678_v28  ;;  %v736_v28 = vld [vmem:[%s4995_s12 + $0xbb0] sm:$0xff]  ;;  %v737_v29 = vld [vmem:[%s4995_s12 + $0xbb8] sm:$0xff] }
  0x90   : > { %v662_v35 = vld [vmem:[%s4995_s12 + $0x960] sm:$0xff] }
  0x91   : > { %4239 = vmatpush3.bf16.msra.mxu0 %v4238_v46  ;;  %v332_v46 = vld [vmem:[%s4990_s8 + $0x98] sm:$0xff] }
  0x92   : > { %4271 = vmatpush3.bf16.msra.mxu1 %v4270_v47  ;;  %4241 = vmatprep.subr.bf16.mxu0 %v4240_v48  ;;  %v4322_v47 = vpack.c.bf16 %v653_v39, %v652_v37  ;;  %v4292_v48 = vpack.c.bf16 %v639_v41, %v638_v40  ;;  %v663_v37 = vld [vmem:[%s4995_s12 + $0x968] sm:$0xff]  ;;  %v649_v39 = vld [vmem:[%s4995_s12 + $0x8f8] sm:$0xff]  ;;  %v680_v40 = vld [vmem:[%s4995_s12 + $0x9f0] sm:$0xff] }
  0x93   : > { %4273 = vmatprep.subr.bf16.mxu1 %v4272_v52  ;;  %v4324_v52 = vpack.c.bf16 %v671_v43, %v670_v42  ;;  %v681_v41 = vld [vmem:[%s4995_s12 + $0x9f8] sm:$0xff]  ;;  %v4342_v43 = vpack.c.bf16 %v663_v37, %v662_v35  ;;  %v720_v35 = vld [vmem:[%s4995_s12 + $0xb30] sm:$0xff] }
  0x94   : > { %v721_v37 = vld [vmem:[%s4995_s12 + $0xb38] sm:$0xff] }
  0x95   : > { %4243 = vmatpush3.bf16.msra.mxu0 %v4242_v58  ;;  %v4294_v58 = vpack.c.bf16 %v623_v50, %v622_v49  ;;  %v665_v49 = vld [vmem:[%s4995_s12 + $0x978] sm:$0xff]  ;;  %v698_v50 = vld [vmem:[%s4995_s12 + $0xa80] sm:$0xff] }
  0x96   : > { %4275 = vmatpush3.bf16.msra.mxu1 %v4274_v59  ;;  %4245 = vmatprep.subr.bf16.mxu0 %v4244_v60  ;;  %v4326_v59 = vpack.c.bf16 %v655_v53, %v654_v51  ;;  %v4296_v60 = vpack.c.bf16 %v641_v55, %v640_v54  ;;  %v699_v51 = vld [vmem:[%s4995_s12 + $0xa88] sm:$0xff] }
  0x97   : > { %4277 = vmatprep.subr.bf16.mxu1 %v4276_v0  ;;  %v4328_v0 = vpack.c.bf16 %v673_v57, %v672_v56  ;;  %v731_v53 = vld [vmem:[%s4995_s12 + $0xb88] sm:$0xff]  ;;  %v4348_v56 = vpack.c.bf16 %v699_v51, %v698_v50  ;;  %v682_v57 = vld [vmem:[%s4995_s12 + $0xa00] sm:$0xff]  ;;  %v708_v50 = vld [vmem:[%s4995_s12 + $0xad0] sm:$0xff] }
  0x98   : > { %v709_v51 = vld [vmem:[%s4995_s12 + $0xad8] sm:$0xff] }
  0x99   : > { %4247 = vmatpush3.bf16.msra.mxu0 %v4246_v6  ;;  %v4298_v6 = vpack.c.bf16 %v625_v62, %v624_v61  ;;  %v715_v61 = vld [vmem:[%s4995_s12 + $0xb08] sm:$0xff]  ;;  %v700_v62 = vld [vmem:[%s4995_s12 + $0xa90] sm:$0xff] }
  0x9a   : > { %4279 = vmatpush3.bf16.msra.mxu1 %v4278_v7  ;;  %4249 = vmatprep.subr.bf16.mxu0 %v4248_v8  ;;  %v4330_v7 = vpack.c.bf16 %v657_v1, %v656_v63  ;;  %v4300_v8 = vpack.c.bf16 %v643_v3, %v642_v2  ;;  %v701_v63 = vld [vmem:[%s4995_s12 + $0xa98] sm:$0xff]  ;;  %v329_v2 = vld [vmem:[%s4990_s8 + $0x80] sm:$0xff] }
  0x9b   : > { %4281 = vmatprep.subr.bf16.mxu1 %v4280_v12  ;;  %v4332_v12 = vpack.c.bf16 %v675_v5, %v674_v4  ;;  %v733_v1 = vld [vmem:[%s4995_s12 + $0xb98] sm:$0xff]  ;;  %v331_v4 = vld [vmem:[%s4990_s8 + $0x90] sm:$0xff] }
  0x9d   : > { %4251 = vmatpush3.bf16.msra.mxu0 %v4250_v18  ;;  %v4302_v18 = vpack.c.bf16 %v627_v10, %v626_v9  ;;  %v716_v9 = vld [vmem:[%s4995_s12 + $0xb10] sm:$0xff] }
  0x9e   : > { %4283 = vmatpush3.bf16.msra.mxu1 %v4282_v19  ;;  %4285 = vmatprep.subr.bf16.mxu0 %v4284_v20  ;;  %v4334_v19 = vpack.c.bf16 %v659_v13, %v658_v11  ;;  %v4304_v20 = vpack.c.bf16 %v645_v15, %v644_v14  ;;  %v717_v11 = vld [vmem:[%s4995_s12 + $0xb18] sm:$0xff]  ;;  %v703_v13 = vld [vmem:[%s4995_s12 + $0xaa8] sm:$0xff]  ;;  %v734_v14 = vld [vmem:[%s4995_s12 + $0xba0] sm:$0xff] }
  0x9f   : > { %4317 = vmatprep.subr.bf16.mxu1 %v4316_v24  ;;  %v4336_v24 = vpack.c.bf16 %v677_v17, %v676_v16  ;;  %v735_v15 = vld [vmem:[%s4995_s12 + $0xba8] sm:$0xff] }
  0xa0   : > { %1631 = vmatmul.mubr.f32.vlgmr.msra.gmra.mrb[6].mxu0 %v325_v30  ;;  %v4306_v30 = vpack.c.bf16 %v629_v22, %v628_v21  ;;  %v334_v16 = vld [vmem:[%s4990_s8 + $0xa8] sm:$0xff]  ;;  %v686_v21 = vld [vmem:[%s4995_s12 + $0xa20] sm:$0xff] }
  0xa1   : > { %4287 = vmatpush3.bf16.msra.mxu0 %v4286_v31  ;;  %1701 = vmatmul.mubr.f32.vlgmr.msra.gmra.mrb[6].mxu1 %v327_v32  ;;  %v4338_v31 = vpack.c.bf16 %v661_v25, %v660_v23  ;;  %v4308_v32 = vpack.c.bf16 %v647_v27, %v646_v26  ;;  %v687_v22 = vld [vmem:[%s4995_s12 + $0xa28] sm:$0xff]  ;;  %v718_v23 = vld [vmem:[%s4995_s12 + $0xb20] sm:$0xff]  ;;  %v704_v26 = vld [vmem:[%s4995_s12 + $0xab0] sm:$0xff] }
  0xa2   : > { %4319 = vmatpush3.bf16.msra.mxu1 %v4318_v33  ;;  %4289 = vmatprep.subr.bf16.mxu0 %v4288_v34  ;;  %v630_v33 = vld [vmem:[%s4995_s12 + $0x860] sm:$0xff]  ;;  %v631_v34 = vld [vmem:[%s4995_s12 + $0x868] sm:$0xff]  ;;  %v705_v27 = vld [vmem:[%s4995_s12 + $0xab8] sm:$0xff] }
  0xa3   : > { %4321 = vmatprep.subr.bf16.mxu1 %v4320_v38  ;;  %1770 = vmatprep.mubr.f32.mxu0 %v330_v44  ;;  %v648_v38 = vld [vmem:[%s4995_s12 + $0x8f0] sm:$0xff]  ;;  %v4310_v42 = vpack.c.bf16 %v631_v34, %v630_v33  ;;  %v719_v25 = vld [vmem:[%s4995_s12 + $0xb28] sm:$0xff]  ;;  %v689_v34 = vld [vmem:[%s4995_s12 + $0xa38] sm:$0xff] }
  0xa4   : > { %1840 = vmatprep.mubr.f32.mxu1 %v332_v46  ;;  %v4312_v44 = vpack.c.bf16 %v649_v39, %v648_v38  ;;  %v633_v46 = vld [vmem:[%s4995_s12 + $0x878] sm:$0xff]  ;;  %v688_v33 = vld [vmem:[%s4995_s12 + $0xa30] sm:$0xff]  ;;  %v706_v38 = vld [vmem:[%s4995_s12 + $0xac0] sm:$0xff] }
  0xa5   : > { %4291 = vmatpush3.bf16.msra.mxu0 %v4290_v45  ;;  %v632_v45 = vld [vmem:[%s4995_s12 + $0x870] sm:$0xff]  ;;  %v707_v39 = vld [vmem:[%s4995_s12 + $0xac8] sm:$0xff] }
  0xa6   : > { %4323 = vmatpush3.bf16.msra.mxu1 %v4322_v47  ;;  %4293 = vmatprep.subr.bf16.mxu0 %v4292_v48  ;;  %v664_v47 = vld [vmem:[%s4995_s12 + $0x970] sm:$0xff]  ;;  %v4344_v48 = vpack.c.bf16 %v681_v41, %v680_v40  ;;  %v4314_v54 = vpack.c.bf16 %v633_v46, %v632_v45  ;;  %v738_v40 = vld [vmem:[%s4995_s12 + $0xbc0] sm:$0xff]  ;;  %v739_v41 = vld [vmem:[%s4995_s12 + $0xbc8] sm:$0xff] }
  0xa7   : > { %4325 = vmatprep.subr.bf16.mxu1 %v4324_v52  ;;  %v730_v52 = vld [vmem:[%s4995_s12 + $0xb80] sm:$0xff]  ;;  %v4346_v55 = vpack.c.bf16 %v665_v49, %v664_v47  ;;  %v691_v46 = vld [vmem:[%s4995_s12 + $0xa48] sm:$0xff] }
  0xa8   : > { %v690_v45 = vld [vmem:[%s4995_s12 + $0xa40] sm:$0xff]  ;;  %v723_v49 = vld [vmem:[%s4995_s12 + $0xb48] sm:$0xff] }
  0xa9   : > { %4295 = vmatpush3.bf16.msra.mxu0 %v4294_v58  ;;  %v683_v58 = vld [vmem:[%s4995_s12 + $0xa08] sm:$0xff]  ;;  %v722_v47 = vld [vmem:[%s4995_s12 + $0xb40] sm:$0xff] }
  0xaa   : > { %4327 = vmatpush3.bf16.msra.mxu1 %v4326_v59  ;;  %4297 = vmatprep.subr.bf16.mxu0 %v4296_v60  ;;  %v714_v59 = vld [vmem:[%s4995_s12 + $0xb00] sm:$0xff]  ;;  %v4380_v60 = vpack.c.bf16 %v731_v53, %v730_v52  ;;  %v4350_v3 = vpack.c.bf16 %v683_v58, %v682_v57  ;;  %v740_v52 = vld [vmem:[%s4995_s12 + $0xbd0] sm:$0xff]  ;;  %v741_v53 = vld [vmem:[%s4995_s12 + $0xbd8] sm:$0xff] }
  0xab   : > { %4329 = vmatprep.subr.bf16.mxu1 %v4328_v0  ;;  %v732_v0 = vld [vmem:[%s4995_s12 + $0xb90] sm:$0xff]  ;;  %v4382_v5 = vpack.c.bf16 %v715_v61, %v714_v59  ;;  %v693_v58 = vld [vmem:[%s4995_s12 + $0xa58] sm:$0xff] }
  0xac   : > { %v4384_v10 = vpack.c.bf16 %v733_v1, %v732_v0  ;;  %v692_v57 = vld [vmem:[%s4995_s12 + $0xa50] sm:$0xff]  ;;  %v725_v61 = vld [vmem:[%s4995_s12 + $0xb58] sm:$0xff]  ;;  %v742_v0 = vld [vmem:[%s4995_s12 + $0xbe0] sm:$0xff] }
  0xad   : > { %4299 = vmatpush3.bf16.msra.mxu0 %v4298_v6  ;;  %v4352_v6 = vpack.c.bf16 %v701_v63, %v700_v62  ;;  %v724_v59 = vld [vmem:[%s4995_s12 + $0xb50] sm:$0xff]  ;;  %v710_v62 = vld [vmem:[%s4995_s12 + $0xae0] sm:$0xff]  ;;  %v711_v63 = vld [vmem:[%s4995_s12 + $0xae8] sm:$0xff] }
  0xae   : > { %4331 = vmatpush3.bf16.msra.mxu1 %v4330_v7  ;;  %4301 = vmatprep.subr.bf16.mxu0 %v4300_v8  ;;  %v684_v7 = vld [vmem:[%s4995_s12 + $0xa10] sm:$0xff]  ;;  %v685_v8 = vld [vmem:[%s4995_s12 + $0xa18] sm:$0xff]  ;;  %v743_v1 = vld [vmem:[%s4995_s12 + $0xbe8] sm:$0xff] }
  0xaf   : > { %4333 = vmatprep.subr.bf16.mxu1 %v4332_v12  ;;  %v702_v12 = vld [vmem:[%s4995_s12 + $0xaa0] sm:$0xff]  ;;  %v4354_v17 = vpack.c.bf16 %v685_v8, %v684_v7  ;;  %v4404_v8 = vpack.c.bf16 %v743_v1, %v742_v0  ;;  %v800_v0 = vld [vmem:[%s4995_s12 + $0xdb0] sm:$0xff]  ;;  %v801_v1 = vld [vmem:[%s4995_s12 + $0xdb8] sm:$0xff] }
  0xb0   : > { %v726_v7 = vld [vmem:[%s4995_s12 + $0xb60] sm:$0xff] }
  0xb1   : > { %4303 = vmatpush3.bf16.msra.mxu0 %v4302_v18  ;;  %v336_v18 = vld [vmem:[%s4990_s8 + $0xb8] sm:$0xff] }
  0xb2   : > { %4335 = vmatpush3.bf16.msra.mxu1 %v4334_v19  ;;  %4305 = vmatprep.subr.bf16.mxu0 %v4304_v20  ;;  %v4386_v19 = vpack.c.bf16 %v717_v11, %v716_v9  ;;  %v4356_v20 = vpack.c.bf16 %v703_v13, %v702_v12  ;;  %v727_v9 = vld [vmem:[%s4995_s12 + $0xb68] sm:$0xff]  ;;  %v713_v11 = vld [vmem:[%s4995_s12 + $0xaf8] sm:$0xff]  ;;  %v744_v12 = vld [vmem:[%s4995_s12 + $0xbf0] sm:$0xff] }
  0xb3   : > { %4337 = vmatprep.subr.bf16.mxu1 %v4336_v24  ;;  %v4388_v24 = vpack.c.bf16 %v735_v15, %v734_v14  ;;  %v745_v13 = vld [vmem:[%s4995_s12 + $0xbf8] sm:$0xff]  ;;  %v4406_v15 = vpack.c.bf16 %v727_v9, %v726_v7  ;;  %v784_v7 = vld [vmem:[%s4995_s12 + $0xd30] sm:$0xff] }
  0xb4   : > { %v785_v9 = vld [vmem:[%s4995_s12 + $0xd38] sm:$0xff] }
  0xb5   : > { %4307 = vmatpush3.bf16.msra.mxu0 %v4306_v30  ;;  %v4358_v30 = vpack.c.bf16 %v687_v22, %v686_v21  ;;  %v729_v21 = vld [vmem:[%s4995_s12 + $0xb78] sm:$0xff]  ;;  %v762_v22 = vld [vmem:[%s4995_s12 + $0xc80] sm:$0xff] }
  0xb6   : > { %4339 = vmatpush3.bf16.msra.mxu1 %v4338_v31  ;;  %4309 = vmatprep.subr.bf16.mxu0 %v4308_v32  ;;  %v4390_v31 = vpack.c.bf16 %v719_v25, %v718_v23  ;;  %v4360_v32 = vpack.c.bf16 %v705_v27, %v704_v26  ;;  %v763_v23 = vld [vmem:[%s4995_s12 + $0xc88] sm:$0xff] }
  0xb7   : > { %4341 = vmatprep.subr.bf16.mxu1 %v4340_v36  ;;  %v4392_v36 = vpack.c.bf16 %v737_v29, %v736_v28  ;;  %v795_v25 = vld [vmem:[%s4995_s12 + $0xd88] sm:$0xff]  ;;  %v4412_v28 = vpack.c.bf16 %v763_v23, %v762_v22  ;;  %v746_v29 = vld [vmem:[%s4995_s12 + $0xc00] sm:$0xff]  ;;  %v772_v22 = vld [vmem:[%s4995_s12 + $0xcd0] sm:$0xff] }
  0xb8   : > { %v773_v23 = vld [vmem:[%s4995_s12 + $0xcd8] sm:$0xff] }
  0xb9   : > { %4311 = vmatpush3.bf16.msra.mxu0 %v4310_v42  ;;  %v4362_v42 = vpack.c.bf16 %v689_v34, %v688_v33  ;;  %v779_v33 = vld [vmem:[%s4995_s12 + $0xd08] sm:$0xff]  ;;  %v764_v34 = vld [vmem:[%s4995_s12 + $0xc90] sm:$0xff] }
  0xba   : > { %4343 = vmatpush3.bf16.msra.mxu1 %v4342_v43  ;;  %4313 = vmatprep.subr.bf16.mxu0 %v4312_v44  ;;  %v4394_v43 = vpack.c.bf16 %v721_v37, %v720_v35  ;;  %v4364_v44 = vpack.c.bf16 %v707_v39, %v706_v38  ;;  %v765_v35 = vld [vmem:[%s4995_s12 + $0xc98] sm:$0xff]  ;;  %v333_v38 = vld [vmem:[%s4990_s8 + $0xa0] sm:$0xff] }
  0xbb   : > { %4345 = vmatprep.subr.bf16.mxu1 %v4344_v48  ;;  %v4396_v48 = vpack.c.bf16 %v739_v41, %v738_v40  ;;  %v797_v37 = vld [vmem:[%s4995_s12 + $0xd98] sm:$0xff]  ;;  %v335_v40 = vld [vmem:[%s4990_s8 + $0xb0] sm:$0xff] }
  0xbd   : > { %4315 = vmatpush3.bf16.msra.mxu0 %v4314_v54  ;;  %v4366_v54 = vpack.c.bf16 %v691_v46, %v690_v45  ;;  %v780_v45 = vld [vmem:[%s4995_s12 + $0xd10] sm:$0xff] }
  0xbe   : > { %4347 = vmatpush3.bf16.msra.mxu1 %v4346_v55  ;;  %4349 = vmatprep.subr.bf16.mxu0 %v4348_v56  ;;  %v4398_v55 = vpack.c.bf16 %v723_v49, %v722_v47  ;;  %v4368_v56 = vpack.c.bf16 %v709_v51, %v708_v50  ;;  %v781_v47 = vld [vmem:[%s4995_s12 + $0xd18] sm:$0xff]  ;;  %v767_v49 = vld [vmem:[%s4995_s12 + $0xca8] sm:$0xff]  ;;  %v798_v50 = vld [vmem:[%s4995_s12 + $0xda0] sm:$0xff] }
  0xbf   : > { %4381 = vmatprep.subr.bf16.mxu1 %v4380_v60  ;;  %v4400_v60 = vpack.c.bf16 %v741_v53, %v740_v52  ;;  %v799_v51 = vld [vmem:[%s4995_s12 + $0xda8] sm:$0xff] }
  0xc0   : > { %1771 = vmatmul.mubr.f32.vlgmr.msra.gmra.mrb[8].mxu0 %v329_v2  ;;  %v4370_v2 = vpack.c.bf16 %v693_v58, %v692_v57  ;;  %v338_v52 = vld [vmem:[%s4990_s8 + $0xc8] sm:$0xff]  ;;  %v750_v57 = vld [vmem:[%s4995_s12 + $0xc20] sm:$0xff] }
  0xc1   : > { %4351 = vmatpush3.bf16.msra.mxu0 %v4350_v3  ;;  %1841 = vmatmul.mubr.f32.vlgmr.msra.gmra.mrb[8].mxu1 %v331_v4  ;;  %v4402_v3 = vpack.c.bf16 %v725_v61, %v724_v59  ;;  %v4372_v4 = vpack.c.bf16 %v711_v63, %v710_v62  ;;  %v751_v58 = vld [vmem:[%s4995_s12 + $0xc28] sm:$0xff]  ;;  %v782_v59 = vld [vmem:[%s4995_s12 + $0xd20] sm:$0xff]  ;;  %v768_v62 = vld [vmem:[%s4995_s12 + $0xcb0] sm:$0xff] }
  0xc2   : > { %4383 = vmatpush3.bf16.msra.mxu1 %v4382_v5  ;;  %4353 = vmatprep.subr.bf16.mxu0 %v4352_v6  ;;  %v694_v5 = vld [vmem:[%s4995_s12 + $0xa60] sm:$0xff]  ;;  %v695_v6 = vld [vmem:[%s4995_s12 + $0xa68] sm:$0xff]  ;;  %v769_v63 = vld [vmem:[%s4995_s12 + $0xcb8] sm:$0xff] }
  0xc3   : > { %4385 = vmatprep.subr.bf16.mxu1 %v4384_v10  ;;  %1910 = vmatprep.mubr.f32.mxu0 %v334_v16  ;;  %v712_v10 = vld [vmem:[%s4995_s12 + $0xaf0] sm:$0xff]  ;;  %v4374_v14 = vpack.c.bf16 %v695_v6, %v694_v5  ;;  %v783_v61 = vld [vmem:[%s4995_s12 + $0xd28] sm:$0xff]  ;;  %v753_v6 = vld [vmem:[%s4995_s12 + $0xc38] sm:$0xff] }
  0xc4   : > { %1980 = vmatprep.mubr.f32.mxu1 %v336_v18  ;;  %v4376_v16 = vpack.c.bf16 %v713_v11, %v712_v10  ;;  %v697_v18 = vld [vmem:[%s4995_s12 + $0xa78] sm:$0xff]  ;;  %v752_v5 = vld [vmem:[%s4995_s12 + $0xc30] sm:$0xff]  ;;  %v770_v10 = vld [vmem:[%s4995_s12 + $0xcc0] sm:$0xff] }
  0xc5   : > { %4355 = vmatpush3.bf16.msra.mxu0 %v4354_v17  ;;  %v696_v17 = vld [vmem:[%s4995_s12 + $0xa70] sm:$0xff]  ;;  %v771_v11 = vld [vmem:[%s4995_s12 + $0xcc8] sm:$0xff] }
  0xc6   : > { %4387 = vmatpush3.bf16.msra.mxu1 %v4386_v19  ;;  %4357 = vmatprep.subr.bf16.mxu0 %v4356_v20  ;;  %v728_v19 = vld [vmem:[%s4995_s12 + $0xb70] sm:$0xff]  ;;  %v4408_v20 = vpack.c.bf16 %v745_v13, %v744_v12  ;;  %v4378_v26 = vpack.c.bf16 %v697_v18, %v696_v17  ;;  %v802_v12 = vld [vmem:[%s4995_s12 + $0xdc0] sm:$0xff]  ;;  %v803_v13 = vld [vmem:[%s4995_s12 + $0xdc8] sm:$0xff] }
  0xc7   : > { %4389 = vmatprep.subr.bf16.mxu1 %v4388_v24  ;;  %v794_v24 = vld [vmem:[%s4995_s12 + $0xd80] sm:$0xff]  ;;  %v4410_v27 = vpack.c.bf16 %v729_v21, %v728_v19  ;;  %v755_v18 = vld [vmem:[%s4995_s12 + $0xc48] sm:$0xff] }
  0xc8   : > { %v754_v17 = vld [vmem:[%s4995_s12 + $0xc40] sm:$0xff]  ;;  %v787_v21 = vld [vmem:[%s4995_s12 + $0xd48] sm:$0xff] }
  0xc9   : > { %4359 = vmatpush3.bf16.msra.mxu0 %v4358_v30  ;;  %v747_v30 = vld [vmem:[%s4995_s12 + $0xc08] sm:$0xff]  ;;  %v786_v19 = vld [vmem:[%s4995_s12 + $0xd40] sm:$0xff] }
  0xca   : > { %4391 = vmatpush3.bf16.msra.mxu1 %v4390_v31  ;;  %4361 = vmatprep.subr.bf16.mxu0 %v4360_v32  ;;  %v778_v31 = vld [vmem:[%s4995_s12 + $0xd00] sm:$0xff]  ;;  %v4444_v32 = vpack.c.bf16 %v795_v25, %v794_v24  ;;  %v4414_v39 = vpack.c.bf16 %v747_v30, %v746_v29  ;;  %v804_v24 = vld [vmem:[%s4995_s12 + $0xdd0] sm:$0xff]  ;;  %v805_v25 = vld [vmem:[%s4995_s12 + $0xdd8] sm:$0xff] }
  0xcb   : > { %4393 = vmatprep.subr.bf16.mxu1 %v4392_v36  ;;  %v796_v36 = vld [vmem:[%s4995_s12 + $0xd90] sm:$0xff]  ;;  %v4446_v41 = vpack.c.bf16 %v779_v33, %v778_v31  ;;  %v757_v30 = vld [vmem:[%s4995_s12 + $0xc58] sm:$0xff] }
  0xcc   : > { %v4448_v46 = vpack.c.bf16 %v797_v37, %v796_v36  ;;  %v756_v29 = vld [vmem:[%s4995_s12 + $0xc50] sm:$0xff]  ;;  %v789_v33 = vld [vmem:[%s4995_s12 + $0xd58] sm:$0xff]  ;;  %v806_v36 = vld [vmem:[%s4995_s12 + $0xde0] sm:$0xff] }
  0xcd   : > { %4363 = vmatpush3.bf16.msra.mxu0 %v4362_v42  ;;  %v4416_v42 = vpack.c.bf16 %v765_v35, %v764_v34  ;;  %v788_v31 = vld [vmem:[%s4995_s12 + $0xd50] sm:$0xff]  ;;  %v774_v34 = vld [vmem:[%s4995_s12 + $0xce0] sm:$0xff]  ;;  %v775_v35 = vld [vmem:[%s4995_s12 + $0xce8] sm:$0xff] }
  0xce   : > { %4395 = vmatpush3.bf16.msra.mxu1 %v4394_v43  ;;  %4365 = vmatprep.subr.bf16.mxu0 %v4364_v44  ;;  %v748_v43 = vld [vmem:[%s4995_s12 + $0xc10] sm:$0xff]  ;;  %v749_v44 = vld [vmem:[%s4995_s12 + $0xc18] sm:$0xff]  ;;  %v807_v37 = vld [vmem:[%s4995_s12 + $0xde8] sm:$0xff] }
  0xcf   : > { %4397 = vmatprep.subr.bf16.mxu1 %v4396_v48  ;;  %v766_v48 = vld [vmem:[%s4995_s12 + $0xca0] sm:$0xff]  ;;  %v4418_v53 = vpack.c.bf16 %v749_v44, %v748_v43  ;;  %v4468_v44 = vpack.c.bf16 %v807_v37, %v806_v36  ;;  %v864_v36 = vld [vmem:[%s4995_s12 + $0xfb0] sm:$0xff]  ;;  %v865_v37 = vld [vmem:[%s4995_s12 + $0xfb8] sm:$0xff] }
  0xd0   : > { %v790_v43 = vld [vmem:[%s4995_s12 + $0xd60] sm:$0xff] }
  0xd1   : > { %4367 = vmatpush3.bf16.msra.mxu0 %v4366_v54  ;;  %v340_v54 = vld [vmem:[%s4990_s8 + $0xd8] sm:$0xff] }
  0xd2   : > { %4399 = vmatpush3.bf16.msra.mxu1 %v4398_v55  ;;  %4369 = vmatprep.subr.bf16.mxu0 %v4368_v56  ;;  %v4450_v55 = vpack.c.bf16 %v781_v47, %v780_v45  ;;  %v4420_v56 = vpack.c.bf16 %v767_v49, %v766_v48  ;;  %v791_v45 = vld [vmem:[%s4995_s12 + $0xd68] sm:$0xff]  ;;  %v777_v47 = vld [vmem:[%s4995_s12 + $0xcf8] sm:$0xff]  ;;  %v808_v48 = vld [vmem:[%s4995_s12 + $0xdf0] sm:$0xff] }
  0xd3   : > { %4401 = vmatprep.subr.bf16.mxu1 %v4400_v60  ;;  %v4452_v60 = vpack.c.bf16 %v799_v51, %v798_v50  ;;  %v809_v49 = vld [vmem:[%s4995_s12 + $0xdf8] sm:$0xff]  ;;  %v4470_v51 = vpack.c.bf16 %v791_v45, %v790_v43  ;;  %v848_v43 = vld [vmem:[%s4995_s12 + $0xf30] sm:$0xff] }
  0xd4   : > { %v849_v45 = vld [vmem:[%s4995_s12 + $0xf38] sm:$0xff] }
  0xd5   : > { %4371 = vmatpush3.bf16.msra.mxu0 %v4370_v2  ;;  %v4422_v2 = vpack.c.bf16 %v751_v58, %v750_v57  ;;  %v793_v57 = vld [vmem:[%s4995_s12 + $0xd78] sm:$0xff]  ;;  %v826_v58 = vld [vmem:[%s4995_s12 + $0xe80] sm:$0xff] }
  0xd6   : > { %4403 = vmatpush3.bf16.msra.mxu1 %v4402_v3  ;;  %4373 = vmatprep.subr.bf16.mxu0 %v4372_v4  ;;  %v4454_v3 = vpack.c.bf16 %v783_v61, %v782_v59  ;;  %v4424_v4 = vpack.c.bf16 %v769_v63, %v768_v62  ;;  %v827_v59 = vld [vmem:[%s4995_s12 + $0xe88] sm:$0xff] }
  0xd7   : > { %4405 = vmatprep.subr.bf16.mxu1 %v4404_v8  ;;  %v4456_v8 = vpack.c.bf16 %v801_v1, %v800_v0  ;;  %v859_v61 = vld [vmem:[%s4995_s12 + $0xf88] sm:$0xff]  ;;  %v4476_v0 = vpack.c.bf16 %v827_v59, %v826_v58  ;;  %v810_v1 = vld [vmem:[%s4995_s12 + $0xe00] sm:$0xff]  ;;  %v836_v58 = vld [vmem:[%s4995_s12 + $0xed0] sm:$0xff] }
  0xd8   : > { %v837_v59 = vld [vmem:[%s4995_s12 + $0xed8] sm:$0xff] }
  0xd9   : > { %4375 = vmatpush3.bf16.msra.mxu0 %v4374_v14  ;;  %v4426_v14 = vpack.c.bf16 %v753_v6, %v752_v5  ;;  %v843_v5 = vld [vmem:[%s4995_s12 + $0xf08] sm:$0xff]  ;;  %v828_v6 = vld [vmem:[%s4995_s12 + $0xe90] sm:$0xff] }
  0xda   : > { %4407 = vmatpush3.bf16.msra.mxu1 %v4406_v15  ;;  %4377 = vmatprep.subr.bf16.mxu0 %v4376_v16  ;;  %v4458_v15 = vpack.c.bf16 %v785_v9, %v784_v7  ;;  %v4428_v16 = vpack.c.bf16 %v771_v11, %v770_v10  ;;  %v829_v7 = vld [vmem:[%s4995_s12 + $0xe98] sm:$0xff]  ;;  %v337_v10 = vld [vmem:[%s4990_s8 + $0xc0] sm:$0xff] }
  0xdb   : > { %4409 = vmatprep.subr.bf16.mxu1 %v4408_v20  ;;  %v4460_v20 = vpack.c.bf16 %v803_v13, %v802_v12  ;;  %v861_v9 = vld [vmem:[%s4995_s12 + $0xf98] sm:$0xff]  ;;  %v339_v12 = vld [vmem:[%s4990_s8 + $0xd0] sm:$0xff] }
  0xdd   : > { %4379 = vmatpush3.bf16.msra.mxu0 %v4378_v26  ;;  %v4430_v26 = vpack.c.bf16 %v755_v18, %v754_v17  ;;  %v844_v17 = vld [vmem:[%s4995_s12 + $0xf10] sm:$0xff] }
  0xde   : > { %4411 = vmatpush3.bf16.msra.mxu1 %v4410_v27  ;;  %4413 = vmatprep.subr.bf16.mxu0 %v4412_v28  ;;  %v4462_v27 = vpack.c.bf16 %v787_v21, %v786_v19  ;;  %v4432_v28 = vpack.c.bf16 %v773_v23, %v772_v22  ;;  %v845_v19 = vld [vmem:[%s4995_s12 + $0xf18] sm:$0xff]  ;;  %v831_v21 = vld [vmem:[%s4995_s12 + $0xea8] sm:$0xff]  ;;  %v862_v22 = vld [vmem:[%s4995_s12 + $0xfa0] sm:$0xff] }
  0xdf   : > { %4445 = vmatprep.subr.bf16.mxu1 %v4444_v32  ;;  %v4464_v32 = vpack.c.bf16 %v805_v25, %v804_v24  ;;  %v863_v23 = vld [vmem:[%s4995_s12 + $0xfa8] sm:$0xff] }
  0xe0   : > { %1911 = vmatmul.mubr.f32.vlgmr.msra.gmra.mrb[10].mxu0 %v333_v38  ;;  %v4434_v38 = vpack.c.bf16 %v757_v30, %v756_v29  ;;  %v342_v24 = vld [vmem:[%s4990_s8 + $0xe8] sm:$0xff]  ;;  %v814_v29 = vld [vmem:[%s4995_s12 + $0xe20] sm:$0xff] }
  0xe1   : > { %4415 = vmatpush3.bf16.msra.mxu0 %v4414_v39  ;;  %1981 = vmatmul.mubr.f32.vlgmr.msra.gmra.mrb[10].mxu1 %v335_v40  ;;  %v4466_v39 = vpack.c.bf16 %v789_v33, %v788_v31  ;;  %v4436_v40 = vpack.c.bf16 %v775_v35, %v774_v34  ;;  %v815_v30 = vld [vmem:[%s4995_s12 + $0xe28] sm:$0xff]  ;;  %v846_v31 = vld [vmem:[%s4995_s12 + $0xf20] sm:$0xff]  ;;  %v832_v34 = vld [vmem:[%s4995_s12 + $0xeb0] sm:$0xff] }
  0xe2   : > { %4447 = vmatpush3.bf16.msra.mxu1 %v4446_v41  ;;  %4417 = vmatprep.subr.bf16.mxu0 %v4416_v42  ;;  %v758_v41 = vld [vmem:[%s4995_s12 + $0xc60] sm:$0xff]  ;;  %v759_v42 = vld [vmem:[%s4995_s12 + $0xc68] sm:$0xff]  ;;  %v833_v35 = vld [vmem:[%s4995_s12 + $0xeb8] sm:$0xff] }
  0xe3   : > { %4449 = vmatprep.subr.bf16.mxu1 %v4448_v46  ;;  %2050 = vmatprep.mubr.f32.mxu0 %v338_v52  ;;  %v776_v46 = vld [vmem:[%s4995_s12 + $0xcf0] sm:$0xff]  ;;  %v4438_v50 = vpack.c.bf16 %v759_v42, %v758_v41  ;;  %v847_v33 = vld [vmem:[%s4995_s12 + $0xf28] sm:$0xff]  ;;  %v817_v42 = vld [vmem:[%s4995_s12 + $0xe38] sm:$0xff] }
  0xe4   : > { %2120 = vmatprep.mubr.f32.mxu1 %v340_v54  ;;  %v4440_v52 = vpack.c.bf16 %v777_v47, %v776_v46  ;;  %v761_v54 = vld [vmem:[%s4995_s12 + $0xc78] sm:$0xff]  ;;  %v816_v41 = vld [vmem:[%s4995_s12 + $0xe30] sm:$0xff]  ;;  %v834_v46 = vld [vmem:[%s4995_s12 + $0xec0] sm:$0xff] }
  0xe5   : > { %4419 = vmatpush3.bf16.msra.mxu0 %v4418_v53  ;;  %v760_v53 = vld [vmem:[%s4995_s12 + $0xc70] sm:$0xff]  ;;  %v835_v47 = vld [vmem:[%s4995_s12 + $0xec8] sm:$0xff] }
  0xe6   : > { %4451 = vmatpush3.bf16.msra.mxu1 %v4450_v55  ;;  %4421 = vmatprep.subr.bf16.mxu0 %v4420_v56  ;;  %v792_v55 = vld [vmem:[%s4995_s12 + $0xd70] sm:$0xff]  ;;  %v4472_v56 = vpack.c.bf16 %v809_v49, %v808_v48  ;;  %v4442_v62 = vpack.c.bf16 %v761_v54, %v760_v53  ;;  %v866_v48 = vld [vmem:[%s4995_s12 + $0xfc0] sm:$0xff]  ;;  %v867_v49 = vld [vmem:[%s4995_s12 + $0xfc8] sm:$0xff] }
  0xe7   : > { %4453 = vmatprep.subr.bf16.mxu1 %v4452_v60  ;;  %v858_v60 = vld [vmem:[%s4995_s12 + $0xf80] sm:$0xff]  ;;  %v4474_v63 = vpack.c.bf16 %v793_v57, %v792_v55  ;;  %v819_v54 = vld [vmem:[%s4995_s12 + $0xe48] sm:$0xff] }
  0xe8   : > { %v818_v53 = vld [vmem:[%s4995_s12 + $0xe40] sm:$0xff]  ;;  %v851_v57 = vld [vmem:[%s4995_s12 + $0xf48] sm:$0xff] }
  0xe9   : > { %4423 = vmatpush3.bf16.msra.mxu0 %v4422_v2  ;;  %v811_v2 = vld [vmem:[%s4995_s12 + $0xe08] sm:$0xff]  ;;  %v850_v55 = vld [vmem:[%s4995_s12 + $0xf40] sm:$0xff] }
  0xea   : > { %4455 = vmatpush3.bf16.msra.mxu1 %v4454_v3  ;;  %4425 = vmatprep.subr.bf16.mxu0 %v4424_v4  ;;  %v842_v3 = vld [vmem:[%s4995_s12 + $0xf00] sm:$0xff]  ;;  %v4508_v4 = vpack.c.bf16 %v859_v61, %v858_v60  ;;  %v4478_v11 = vpack.c.bf16 %v811_v2, %v810_v1  ;;  %v868_v60 = vld [vmem:[%s4995_s12 + $0xfd0] sm:$0xff]  ;;  %v869_v61 = vld [vmem:[%s4995_s12 + $0xfd8] sm:$0xff] }
  0xeb   : > { %4457 = vmatprep.subr.bf16.mxu1 %v4456_v8  ;;  %v860_v8 = vld [vmem:[%s4995_s12 + $0xf90] sm:$0xff]  ;;  %v4510_v13 = vpack.c.bf16 %v843_v5, %v842_v3  ;;  %v821_v2 = vld [vmem:[%s4995_s12 + $0xe58] sm:$0xff] }
  0xec   : > { %v4512_v18 = vpack.c.bf16 %v861_v9, %v860_v8  ;;  %v820_v1 = vld [vmem:[%s4995_s12 + $0xe50] sm:$0xff]  ;;  %v853_v5 = vld [vmem:[%s4995_s12 + $0xf58] sm:$0xff]  ;;  %v870_v8 = vld [vmem:[%s4995_s12 + $0xfe0] sm:$0xff] }
  0xed   : > { %4427 = vmatpush3.bf16.msra.mxu0 %v4426_v14  ;;  %v4480_v14 = vpack.c.bf16 %v829_v7, %v828_v6  ;;  %v852_v3 = vld [vmem:[%s4995_s12 + $0xf50] sm:$0xff]  ;;  %v838_v6 = vld [vmem:[%s4995_s12 + $0xee0] sm:$0xff]  ;;  %v839_v7 = vld [vmem:[%s4995_s12 + $0xee8] sm:$0xff] }
  0xee   : > { %4459 = vmatpush3.bf16.msra.mxu1 %v4458_v15  ;;  %4429 = vmatprep.subr.bf16.mxu0 %v4428_v16  ;;  %v812_v15 = vld [vmem:[%s4995_s12 + $0xe10] sm:$0xff]  ;;  %v813_v16 = vld [vmem:[%s4995_s12 + $0xe18] sm:$0xff]  ;;  %v871_v9 = vld [vmem:[%s4995_s12 + $0xfe8] sm:$0xff] }
  0xef   : > { %4461 = vmatprep.subr.bf16.mxu1 %v4460_v20  ;;  %v830_v20 = vld [vmem:[%s4995_s12 + $0xea0] sm:$0xff]  ;;  %v4482_v25 = vpack.c.bf16 %v813_v16, %v812_v15 }
  0xf0   : > { %v854_v15 = vld [vmem:[%s4995_s12 + $0xf60] sm:$0xff] }
  0xf1   : > { %4431 = vmatpush3.bf16.msra.mxu0 %v4430_v26  ;;  %v344_v26 = vld [vmem:[%s4990_s8 + $0xf8] sm:$0xff] }
  0xf2   : > { %4463 = vmatpush3.bf16.msra.mxu1 %v4462_v27  ;;  %4433 = vmatprep.subr.bf16.mxu0 %v4432_v28  ;;  %v4514_v27 = vpack.c.bf16 %v845_v19, %v844_v17  ;;  %v4484_v28 = vpack.c.bf16 %v831_v21, %v830_v20  ;;  %v4532_v17 = vpack.c.bf16 %v871_v9, %v870_v8  ;;  %v840_v19 = vld [vmem:[%s4995_s12 + $0xef0] sm:$0xff]  ;;  %v841_v20 = vld [vmem:[%s4995_s12 + $0xef8] sm:$0xff]  ;;  %v878_v8 = vld [vmem:[%s4995_s12 + $0x1020] sm:$0xff] }
  0xf3   : > { %4465 = vmatprep.subr.bf16.mxu1 %v4464_v32  ;;  %v4516_v32 = vpack.c.bf16 %v863_v23, %v862_v22  ;;  %v872_v23 = vld [vmem:[%s4995_s12 + $0xff0] sm:$0xff]  ;;  %v879_v9 = vld [vmem:[%s4995_s12 + $0x1028] sm:$0xff] }
  0xf5   : > { %4435 = vmatpush3.bf16.msra.mxu0 %v4434_v38  ;;  %v4486_v38 = vpack.c.bf16 %v815_v30, %v814_v29  ;;  %v4504_v30 = vpack.c.bf16 %v841_v20, %v840_v19  ;;  %v880_v20 = vld [vmem:[%s4995_s12 + $0x1030] sm:$0xff] }
  0xf6   : > { %4467 = vmatpush3.bf16.msra.mxu1 %v4466_v39  ;;  %4437 = vmatprep.subr.bf16.mxu0 %v4436_v40  ;;  %v4518_v39 = vpack.c.bf16 %v847_v33, %v846_v31  ;;  %v4488_v40 = vpack.c.bf16 %v833_v35, %v832_v34  ;;  %v824_v31 = vld [vmem:[%s4995_s12 + $0xe70] sm:$0xff]  ;;  %v857_v35 = vld [vmem:[%s4995_s12 + $0xf78] sm:$0xff] }
  0xf7   : > { %4469 = vmatprep.subr.bf16.mxu1 %v4468_v44  ;;  %v4520_v44 = vpack.c.bf16 %v865_v37, %v864_v36  ;;  %v856_v33 = vld [vmem:[%s4995_s12 + $0xf70] sm:$0xff]  ;;  %v890_v36 = vld [vmem:[%s4995_s12 + $0x1080] sm:$0xff]  ;;  %v891_v37 = vld [vmem:[%s4995_s12 + $0x1088] sm:$0xff] }
  0xf9   : > { %4439 = vmatpush3.bf16.msra.mxu0 %v4438_v50  ;;  %v4490_v50 = vpack.c.bf16 %v817_v42, %v816_v41  ;;  %v4538_v42 = vpack.c.bf16 %v857_v35, %v856_v33  ;;  %v883_v33 = vld [vmem:[%s4995_s12 + $0x1048] sm:$0xff] }
  0xfa   : > { %4471 = vmatpush3.bf16.msra.mxu1 %v4470_v51  ;;  %4441 = vmatprep.subr.bf16.mxu0 %v4440_v52  ;;  %v4522_v51 = vpack.c.bf16 %v849_v45, %v848_v43  ;;  %v4492_v52 = vpack.c.bf16 %v835_v47, %v834_v46  ;;  %v4540_v43 = vpack.c.bf16 %v891_v37, %v890_v36  ;;  %v875_v45 = vld [vmem:[%s4995_s12 + $0x1008] sm:$0xff]  ;;  %v906_v46 = vld [vmem:[%s4995_s12 + $0x1100] sm:$0xff]  ;;  %v900_v37 = vld [vmem:[%s4995_s12 + $0x10d0] sm:$0xff] }
  0xfb   : > { %4473 = vmatprep.subr.bf16.mxu1 %v4472_v56  ;;  %v4524_v56 = vpack.c.bf16 %v867_v49, %v866_v48  ;;  %v907_v48 = vld [vmem:[%s4995_s12 + $0x1108] sm:$0xff]  ;;  %v892_v49 = vld [vmem:[%s4995_s12 + $0x1090] sm:$0xff] }
  0xfc   : > { %v915_v36 = vld [vmem:[%s4995_s12 + $0x1148] sm:$0xff] }
  0xfd   : > { %4443 = vmatpush3.bf16.msra.mxu0 %v4442_v62  ;;  %v4494_v62 = vpack.c.bf16 %v819_v54, %v818_v53  ;;  %v341_v53 = vld [vmem:[%s4990_s8 + $0xe0] sm:$0xff] }
  0xfe   : > { %4475 = vmatpush3.bf16.msra.mxu1 %v4474_v63  ;;  %4477 = vmatprep.subr.bf16.mxu0 %v4476_v0  ;;  %v4526_v63 = vpack.c.bf16 %v851_v57, %v850_v55  ;;  %v4496_v0 = vpack.c.bf16 %v837_v59, %v836_v58  ;;  %v343_v55 = vld [vmem:[%s4990_s8 + $0xf0] sm:$0xff]  ;;  %v877_v59 = vld [vmem:[%s4995_s12 + $0x1018] sm:$0xff] }
  0xff   : > { %4509 = vmatprep.subr.bf16.mxu1 %v4508_v4  ;;  %v4528_v4 = vpack.c.bf16 %v869_v61, %v868_v60  ;;  %v876_v58 = vld [vmem:[%s4995_s12 + $0x1010] sm:$0xff] }
 0x100   : > { %2051 = vmatmul.mubr.f32.vlgmr.msra.gmra.mrb[12].mxu0 %v337_v10  ;;  %v4498_v10 = vpack.c.bf16 %v821_v2, %v820_v1  ;;  %v908_v60 = vld [vmem:[%s4995_s12 + $0x1110] sm:$0xff]  ;;  %v926_v1 = vld [vmem:[%s4995_s12 + $0x11a0] sm:$0xff]  ;;  %v927_v2 = vld [vmem:[%s4995_s12 + $0x11a8] sm:$0xff] }
 0x101   : > { %4479 = vmatpush3.bf16.msra.mxu0 %v4478_v11  ;;  %2121 = vmatmul.mubr.f32.vlgmr.msra.gmra.mrb[12].mxu1 %v339_v12  ;;  %v4530_v11 = vpack.c.bf16 %v853_v5, %v852_v3  ;;  %v4500_v12 = vpack.c.bf16 %v839_v7, %v838_v6  ;;  %v346_v3 = vld [vmem:[%s4990_s8 + $0x108] sm:$0xff]  ;;  %v348_v5 = vld [vmem:[%s4990_s8 + $0x118] sm:$0xff] }
 0x102   : > { %4511 = vmatpush3.bf16.msra.mxu1 %v4510_v13  ;;  %4481 = vmatprep.subr.bf16.mxu0 %v4480_v14  ;;  %v822_v13 = vld [vmem:[%s4995_s12 + $0xe60] sm:$0xff]  ;;  %v823_v14 = vld [vmem:[%s4995_s12 + $0xe68] sm:$0xff] }
 0x103   : > { %4513 = vmatprep.subr.bf16.mxu1 %v4512_v18  ;;  %2190 = vmatprep.mubr.f32.mxu0 %v342_v24  ;;  %v855_v18 = vld [vmem:[%s4995_s12 + $0xf68] sm:$0xff]  ;;  %v873_v24 = vld [vmem:[%s4995_s12 + $0xff8] sm:$0xff] }
 0x104   : > { %2260 = vmatprep.mubr.f32.mxu1 %v344_v26  ;;  %v4534_v29 = vpack.c.bf16 %v855_v18, %v854_v15  ;;  %v4536_v34 = vpack.c.bf16 %v873_v24, %v872_v23  ;;  %v928_v15 = vld [vmem:[%s4995_s12 + $0x11b0] sm:$0xff]  ;;  %v913_v24 = vld [vmem:[%s4995_s12 + $0x1138] sm:$0xff] }
 0x105   : > { %4483 = vmatpush3.bf16.msra.mxu0 %v4482_v25 }
 0x106   : > { %4515 = vmatpush3.bf16.msra.mxu1 %v4514_v27  ;;  %4485 = vmatprep.subr.bf16.mxu0 %v4484_v28  ;;  %v4502_v27 = vpack.c.bf16 %v823_v14, %v822_v13  ;;  %v896_v13 = vld [vmem:[%s4995_s12 + $0x10b0] sm:$0xff]  ;;  %v897_v14 = vld [vmem:[%s4995_s12 + $0x10b8] sm:$0xff] }
 0x107   : > { %4517 = vmatprep.subr.bf16.mxu1 %v4516_v32  ;;  %v825_v32 = vld [vmem:[%s4995_s12 + $0xe78] sm:$0xff]  ;;  %v4552_v19 = vpack.c.bf16 %v897_v14, %v896_v13  ;;  %v920_v13 = vld [vmem:[%s4995_s12 + $0x1170] sm:$0xff] }
 0x108   : > { %v4506_v41 = vpack.c.bf16 %v825_v32, %v824_v31  ;;  %v882_v32 = vld [vmem:[%s4995_s12 + $0x1040] sm:$0xff] }
 0x109   : > { %4487 = vmatpush3.bf16.msra.mxu0 %v4486_v38 }
 0x10a   : > { %4519 = vmatpush3.bf16.msra.mxu1 %v4518_v39  ;;  %4489 = vmatprep.subr.bf16.mxu0 %v4488_v40  ;;  %v922_v39 = vld [vmem:[%s4995_s12 + $0x1180] sm:$0xff]  ;;  %v923_v40 = vld [vmem:[%s4995_s12 + $0x1188] sm:$0xff] }
 0x10b   : > { %4521 = vmatprep.subr.bf16.mxu1 %v4520_v44  ;;  %v874_v44 = vld [vmem:[%s4995_s12 + $0x1000] sm:$0xff]  ;;  %v4572_v47 = vpack.c.bf16 %v923_v40, %v922_v39  ;;  %v901_v39 = vld [vmem:[%s4995_s12 + $0x10d8] sm:$0xff]  ;;  %v932_v40 = vld [vmem:[%s4995_s12 + $0x11d0] sm:$0xff] }
 0x10c   : > { %v4542_v54 = vpack.c.bf16 %v875_v45, %v874_v44  ;;  %v4560_v44 = vpack.c.bf16 %v901_v39, %v900_v37  ;;  %v884_v45 = vld [vmem:[%s4995_s12 + $0x1050] sm:$0xff] }
 0x10d   : > { %4491 = vmatpush3.bf16.msra.mxu0 %v4490_v50  ;;  %v893_v50 = vld [vmem:[%s4995_s12 + $0x1098] sm:$0xff]  ;;  %v940_v39 = vld [vmem:[%s4995_s12 + $0x1210] sm:$0xff] }
 0x10e   : > { %4523 = vmatpush3.bf16.msra.mxu1 %v4522_v51  ;;  %4493 = vmatprep.subr.bf16.mxu0 %v4492_v52  ;;  %v924_v51 = vld [vmem:[%s4995_s12 + $0x1190] sm:$0xff]  ;;  %v925_v52 = vld [vmem:[%s4995_s12 + $0x1198] sm:$0xff]  ;;  %v4544_v57 = vpack.c.bf16 %v893_v50, %v892_v49  ;;  %v902_v50 = vld [vmem:[%s4995_s12 + $0x10e0] sm:$0xff] }
 0x10f   : > { %4525 = vmatprep.subr.bf16.mxu1 %v4524_v56  ;;  %v4574_v56 = vpack.c.bf16 %v907_v48, %v906_v46  ;;  %v4576_v61 = vpack.c.bf16 %v925_v52, %v924_v51  ;;  %v885_v46 = vld [vmem:[%s4995_s12 + $0x1058] sm:$0xff]  ;;  %v903_v51 = vld [vmem:[%s4995_s12 + $0x10e8] sm:$0xff]  ;;  %v934_v52 = vld [vmem:[%s4995_s12 + $0x11e0] sm:$0xff] }
 0x110   : > { %v917_v49 = vld [vmem:[%s4995_s12 + $0x1158] sm:$0xff] }
 0x111   : > { %4495 = vmatpush3.bf16.msra.mxu0 %v4494_v62  ;;  %v909_v62 = vld [vmem:[%s4995_s12 + $0x1118] sm:$0xff] }
 0x112   : > { %4527 = vmatpush3.bf16.msra.mxu1 %v4526_v63  ;;  %4497 = vmatprep.subr.bf16.mxu0 %v4496_v0  ;;  %v894_v63 = vld [vmem:[%s4995_s12 + $0x10a0] sm:$0xff]  ;;  %v895_v0 = vld [vmem:[%s4995_s12 + $0x10a8] sm:$0xff]  ;;  %v4578_v6 = vpack.c.bf16 %v909_v62, %v908_v60 }
 0x113   : > { %v3152_v16 = vpop.f32.mrb[0].mxu0  ;;  %4529 = vmatprep.subr.bf16.mxu1 %v4528_v4  ;;  %v4546_v4 = vpack.c.bf16 %v877_v59, %v876_v58  ;;  %v4548_v7 = vpack.c.bf16 %v895_v0, %v894_v63  ;;  %v887_v58 = vld [vmem:[%s4995_s12 + $0x1068] sm:$0xff]  ;;  %v918_v59 = vld [vmem:[%s4995_s12 + $0x1160] sm:$0xff]  ;;  %v904_v63 = vld [vmem:[%s4995_s12 + $0x10f0] sm:$0xff] }
 0x114   : > { %v3187_v21 = vpop.f32.mrb[0].mxu1  ;;  %v3153_v22 = vpop.f32.mrb[1].mxu0  ;;  %v919_v62 = vld [vmem:[%s4995_s12 + $0x1168] sm:$0xff]  ;;  %v905_v0 = vld [vmem:[%s4995_s12 + $0x10f8] sm:$0xff] }
 0x115   : > { %v3154_v25 = vadd.f32 %v3153_v22, %v3152_v16  ;;  %v3188_v26 = vpop.f32.mrb[1].mxu1  ;;  %4499 = vmatpush3.bf16.msra.mxu0 %v4498_v10  ;;  %v910_v10 = vld [vmem:[%s4995_s12 + $0x1120] sm:$0xff]  ;;  %v929_v16 = vld [vmem:[%s4995_s12 + $0x11b8] sm:$0xff]  ;;  %v912_v22 = vld [vmem:[%s4995_s12 + $0x1130] sm:$0xff] }
 0x116   : > { %v3189_v28 = vadd.f32 %v3188_v26, %v3187_v21  ;;  %4531 = vmatpush3.bf16.msra.mxu1 %v4530_v11  ;;  %4501 = vmatprep.subr.bf16.mxu0 %v4500_v12  ;;  %v4580_v11 = vpack.c.bf16 %v927_v2, %v926_v1  ;;  %v911_v12 = vld [vmem:[%s4995_s12 + $0x1128] sm:$0xff]  ;;  %v881_v21 = vld [vmem:[%s4995_s12 + $0x1038] sm:$0xff]  ;;  %v4584_v23 = vpack.c.bf16 %v929_v16, %v928_v15 }
 0x117   : > { %4533 = vmatprep.subr.bf16.mxu1 %v4532_v17  ;;  %v4550_v17 = vpack.c.bf16 %v879_v9, %v878_v8  ;;  %v4582_v18 = vpack.c.bf16 %v911_v12, %v910_v10  ;;  %v899_v26 = vld [vmem:[%s4995_s12 + $0x10c8] sm:$0xff]  ;;  %v4598_v9 = vpack.c.bf16 %v919_v62, %v918_v59  ;;  %v4568_v10 = vpack.c.bf16 %v905_v0, %v904_v63  ;;  %v889_v12 = vld [vmem:[%s4995_s12 + $0x1078] sm:$0xff] }
 0x118   : > { %v5542_v38 = vadd.f32 %v3189_v28, %v3154_v25  ;;  %v898_v25 = vld [vmem:[%s4995_s12 + $0x10c0] sm:$0xff]  ;;  %v931_v28 = vld [vmem:[%s4995_s12 + $0x11c8] sm:$0xff]  ;;  %v921_v16 = vld [vmem:[%s4995_s12 + $0x1178] sm:$0xff] }
 0x119   : > { %4503 = vmatpush3.bf16.msra.mxu0 %v4502_v27  ;;  %v930_v27 = vld [vmem:[%s4995_s12 + $0x11c0] sm:$0xff]  ;;  %v4556_v31 = vpack.c.bf16 %v899_v26, %v898_v25  ;;  %v939_v25 = vld [vmem:[%s4995_s12 + $0x1208] sm:$0xff]  ;;  %v961_v59 = vld [vmem:[%s4995_s12 + $0x12b8] sm:$0xff] }
 0x11a   : > { %4535 = vmatpush3.bf16.msra.mxu1 %v4534_v29  ;;  %4505 = vmatprep.subr.bf16.mxu0 %v4504_v30  ;;  %v4554_v29 = vpack.c.bf16 %v881_v21, %v880_v20  ;;  %v4586_v30 = vpack.c.bf16 %v913_v24, %v912_v22  ;;  %v4588_v35 = vpack.c.bf16 %v931_v28, %v930_v27  ;;  %v987_v20 = vld [vmem:[%s4995_s12 + $0x1388] sm:$0xff]  ;;  %v938_v24 = vld [vmem:[%s4995_s12 + $0x1200] sm:$0xff] }
 0x11b   : > { %4537 = vmatprep.subr.bf16.mxu1 %v4536_v34  ;;  %v914_v34 = vld [vmem:[%s4995_s12 + $0x1140] sm:$0xff]  ;;  %v971_v28 = vld [vmem:[%s4995_s12 + $0x1308] sm:$0xff] }
 0x11c   : > { %v970_v26 = vld [vmem:[%s4995_s12 + $0x1300] sm:$0xff] }
 0x11d   : > { %4507 = vmatpush3.bf16.msra.mxu0 %v4506_v41  ;;  %v933_v41 = vld [vmem:[%s4995_s12 + $0x11d8] sm:$0xff] }
 0x11e   : > { %4539 = vmatpush3.bf16.msra.mxu1 %v4538_v42  ;;  %4541 = vmatprep.subr.bf16.mxu0 %v4540_v43  ;;  %v4558_v42 = vpack.c.bf16 %v883_v33, %v882_v32  ;;  %v4590_v43 = vpack.c.bf16 %v915_v36, %v914_v34  ;;  %v4592_v48 = vpack.c.bf16 %v933_v41, %v932_v40  ;;  %v989_v32 = vld [vmem:[%s4995_s12 + $0x1398] sm:$0xff]  ;;  %v345_v33 = vld [vmem:[%s4990_s8 + $0x100] sm:$0xff]  ;;  %v972_v41 = vld [vmem:[%s4995_s12 + $0x1310] sm:$0xff] }
 0x11f   : > { %4573 = vmatprep.subr.bf16.mxu1 %v4572_v47  ;;  %v916_v47 = vld [vmem:[%s4995_s12 + $0x1150] sm:$0xff]  ;;  %v4606_v34 = vpack.c.bf16 %v939_v25, %v938_v24  ;;  %v4638_v36 = vpack.c.bf16 %v971_v28, %v970_v26  ;;  %v941_v40 = vld [vmem:[%s4995_s12 + $0x1218] sm:$0xff] }
 0x120   : > { %2191 = vmatmul.mubr.f32.vlgmr.msra.gmra.mrb[14].mxu0 %v341_v53  ;;  %v935_v53 = vld [vmem:[%s4995_s12 + $0x11e8] sm:$0xff]  ;;  %v948_v25 = vld [vmem:[%s4995_s12 + $0x1250] sm:$0xff]  ;;  %v949_v26 = vld [vmem:[%s4995_s12 + $0x1258] sm:$0xff] }
 0x121   : > { %4543 = vmatpush3.bf16.msra.mxu0 %v4542_v54  ;;  %2261 = vmatmul.mubr.f32.vlgmr.msra.gmra.mrb[14].mxu1 %v343_v55  ;;  %v4562_v54 = vpack.c.bf16 %v885_v46, %v884_v45  ;;  %v4594_v55 = vpack.c.bf16 %v917_v49, %v916_v47  ;;  %v959_v45 = vld [vmem:[%s4995_s12 + $0x12a8] sm:$0xff]  ;;  %v990_v46 = vld [vmem:[%s4995_s12 + $0x13a0] sm:$0xff]  ;;  %v4610_v49 = vpack.c.bf16 %v941_v40, %v940_v39 }
 0x122   : > { %4575 = vmatpush3.bf16.msra.mxu1 %v4574_v56  ;;  %4545 = vmatprep.subr.bf16.mxu0 %v4544_v57  ;;  %v4564_v56 = vpack.c.bf16 %v903_v51, %v902_v50  ;;  %v886_v57 = vld [vmem:[%s4995_s12 + $0x1060] sm:$0xff]  ;;  %v991_v47 = vld [vmem:[%s4995_s12 + $0x13a8] sm:$0xff]  ;;  %v352_v50 = vld [vmem:[%s4990_s8 + $0x138] sm:$0xff] }
 0x123   : > { %4577 = vmatprep.subr.bf16.mxu1 %v4576_v61  ;;  %2330 = vmatprep.mubr.f32.mxu0 %v346_v3  ;;  %v4596_v61 = vpack.c.bf16 %v935_v53, %v934_v52  ;;  %v936_v3 = vld [vmem:[%s4995_s12 + $0x11f0] sm:$0xff]  ;;  %v942_v53 = vld [vmem:[%s4995_s12 + $0x1220] sm:$0xff]  ;;  %v951_v39 = vld [vmem:[%s4995_s12 + $0x1268] sm:$0xff] }
 0x124   : > { %2400 = vmatprep.mubr.f32.mxu1 %v348_v5  ;;  %v982_v40 = vld [vmem:[%s4995_s12 + $0x1360] sm:$0xff] }
 0x125   : > { %4547 = vmatpush3.bf16.msra.mxu0 %v4546_v4  ;;  %v937_v4 = vld [vmem:[%s4995_s12 + $0x11f8] sm:$0xff] }
 0x126   : > { %4579 = vmatpush3.bf16.msra.mxu1 %v4578_v6  ;;  %4549 = vmatprep.subr.bf16.mxu0 %v4548_v7  ;;  %v4566_v7 = vpack.c.bf16 %v887_v58, %v886_v57  ;;  %v4600_v15 = vpack.c.bf16 %v937_v4, %v936_v3  ;;  %v975_v57 = vld [vmem:[%s4995_s12 + $0x1328] sm:$0xff]  ;;  %v960_v58 = vld [vmem:[%s4995_s12 + $0x12b0] sm:$0xff] }
 0x127   : > { %4581 = vmatprep.subr.bf16.mxu1 %v4580_v11  ;;  %v888_v11 = vld [vmem:[%s4995_s12 + $0x1070] sm:$0xff]  ;;  %v4616_v0 = vpack.c.bf16 %v961_v59, %v960_v58 }
 0x128   : > { %v4570_v22 = vpack.c.bf16 %v889_v12, %v888_v11  ;;  %v976_v3 = vld [vmem:[%s4995_s12 + $0x1330] sm:$0xff] }
 0x129   : > { %4551 = vmatpush3.bf16.msra.mxu0 %v4550_v17  ;;  %v954_v17 = vld [vmem:[%s4995_s12 + $0x1280] sm:$0xff]  ;;  %v984_v58 = vld [vmem:[%s4995_s12 + $0x1370] sm:$0xff] }
 0x12a   : > { %4583 = vmatpush3.bf16.msra.mxu1 %v4582_v18  ;;  %4553 = vmatprep.subr.bf16.mxu0 %v4552_v19  ;;  %v955_v18 = vld [vmem:[%s4995_s12 + $0x1288] sm:$0xff]  ;;  %v986_v19 = vld [vmem:[%s4995_s12 + $0x1380] sm:$0xff] }
 0x12b   : > { %4585 = vmatprep.subr.bf16.mxu1 %v4584_v23  ;;  %v4604_v23 = vpack.c.bf16 %v955_v18, %v954_v17  ;;  %v4636_v27 = vpack.c.bf16 %v987_v20, %v986_v19  ;;  %v979_v17 = vld [vmem:[%s4995_s12 + $0x1348] sm:$0xff]  ;;  %v964_v18 = vld [vmem:[%s4995_s12 + $0x12d0] sm:$0xff]  ;;  %v965_v19 = vld [vmem:[%s4995_s12 + $0x12d8] sm:$0xff] }
 0x12c   : > { %v996_v20 = vld [vmem:[%s4995_s12 + $0x13d0] sm:$0xff]  ;;  %v4624_v24 = vpack.c.bf16 %v965_v19, %v964_v18 }
 0x12d   : > { %4555 = vmatpush3.bf16.msra.mxu0 %v4554_v29  ;;  %v956_v29 = vld [vmem:[%s4995_s12 + $0x1290] sm:$0xff] }
 0x12e   : > { %4587 = vmatpush3.bf16.msra.mxu1 %v4586_v30  ;;  %4557 = vmatprep.subr.bf16.mxu0 %v4556_v31  ;;  %v957_v30 = vld [vmem:[%s4995_s12 + $0x1298] sm:$0xff]  ;;  %v988_v31 = vld [vmem:[%s4995_s12 + $0x1390] sm:$0xff] }
 0x12f   : > { %4589 = vmatprep.subr.bf16.mxu1 %v4588_v35  ;;  %v347_v35 = vld [vmem:[%s4990_s8 + $0x110] sm:$0xff]  ;;  %v4608_v37 = vpack.c.bf16 %v957_v30, %v956_v29  ;;  %v981_v29 = vld [vmem:[%s4995_s12 + $0x1358] sm:$0xff]  ;;  %v966_v30 = vld [vmem:[%s4995_s12 + $0x12e0] sm:$0xff] }
 0x130   : > { %v1004_v19 = vld [vmem:[%s4995_s12 + $0x1410] sm:$0xff] }
 0x131   : > { %4559 = vmatpush3.bf16.msra.mxu0 %v4558_v42  ;;  %v4640_v42 = vpack.c.bf16 %v989_v32, %v988_v31  ;;  %v967_v31 = vld [vmem:[%s4995_s12 + $0x12e8] sm:$0xff]  ;;  %v998_v32 = vld [vmem:[%s4995_s12 + $0x13e0] sm:$0xff] }
 0x132   : > { %4591 = vmatpush3.bf16.msra.mxu1 %v4590_v43  ;;  %4561 = vmatprep.subr.bf16.mxu0 %v4560_v44  ;;  %v973_v43 = vld [vmem:[%s4995_s12 + $0x1318] sm:$0xff]  ;;  %v958_v44 = vld [vmem:[%s4995_s12 + $0x12a0] sm:$0xff] }
 0x133   : > { %v3222_v60 = vpop.f32.mrb[2].mxu0  ;;  %4593 = vmatprep.subr.bf16.mxu1 %v4592_v48  ;;  %v350_v48 = vld [vmem:[%s4990_s8 + $0x128] sm:$0xff]  ;;  %v4642_v51 = vpack.c.bf16 %v973_v43, %v972_v41  ;;  %v4612_v52 = vpack.c.bf16 %v959_v45, %v958_v44  ;;  %v968_v44 = vld [vmem:[%s4995_s12 + $0x12f0] sm:$0xff]  ;;  %v969_v45 = vld [vmem:[%s4995_s12 + $0x12f8] sm:$0xff] }
 0x134   : > { %v3223_v1 = vpop.f32.mrb[3].mxu0  ;;  %v3257_v2 = vpop.f32.mrb[2].mxu1  ;;  %v983_v43 = vld [vmem:[%s4995_s12 + $0x1368] sm:$0xff] }
 0x135   : > { %v3224_v5 = vadd.f32 %v3223_v1, %v3222_v60  ;;  %4563 = vmatpush3.bf16.msra.mxu0 %v4562_v54  ;;  %v3258_v6 = vpop.f32.mrb[3].mxu1  ;;  %v943_v54 = vld [vmem:[%s4995_s12 + $0x1228] sm:$0xff]  ;;  %v992_v60 = vld [vmem:[%s4995_s12 + $0x13b0] sm:$0xff] }
 0x136   : > { %v3259_v8 = vadd.f32 %v3258_v6, %v3257_v2  ;;  %4595 = vmatpush3.bf16.msra.mxu1 %v4594_v55  ;;  %4565 = vmatprep.subr.bf16.mxu0 %v4564_v56  ;;  %v974_v55 = vld [vmem:[%s4995_s12 + $0x1320] sm:$0xff]  ;;  %v4644_v56 = vpack.c.bf16 %v991_v47, %v990_v46  ;;  %v4614_v62 = vpack.c.bf16 %v943_v54, %v942_v53  ;;  %v944_v1 = vld [vmem:[%s4995_s12 + $0x1230] sm:$0xff]  ;;  %v945_v2 = vld [vmem:[%s4995_s12 + $0x1238] sm:$0xff] }
 0x137   : > { %v1353_v14 = vadd.f32 %v3224_v5, %v5542_v38  ;;  %4597 = vmatprep.subr.bf16.mxu1 %v4596_v61  ;;  %v4602_v38 = vpack.c.bf16 %v921_v16, %v920_v13  ;;  %v993_v61 = vld [vmem:[%s4995_s12 + $0x13b8] sm:$0xff]  ;;  %v4646_v63 = vpack.c.bf16 %v975_v57, %v974_v55  ;;  %v962_v6 = vld [vmem:[%s4995_s12 + $0x12c0] sm:$0xff]  ;;  %v4662_v54 = vpack.c.bf16 %v983_v43, %v982_v40 }
 0x138   : > { %v4648_v4 = vpack.c.bf16 %v993_v61, %v992_v60  ;;  %v977_v5 = vld [vmem:[%s4995_s12 + $0x1338] sm:$0xff]  ;;  %v946_v13 = vld [vmem:[%s4995_s12 + $0x1240] sm:$0xff]  ;;  %v4632_v55 = vpack.c.bf16 %v969_v45, %v968_v44 }
 0x139   : > { %v5615_v21 = vadd.f32 %v3259_v8, %v1353_v14  ;;  %4567 = vmatpush3.bf16.msra.mxu0 %v4566_v7  ;;  %v963_v7 = vld [vmem:[%s4995_s12 + $0x12c8] sm:$0xff]  ;;  %v994_v8 = vld [vmem:[%s4995_s12 + $0x13c0] sm:$0xff]  ;;  %v4650_v11 = vpack.c.bf16 %v977_v5, %v976_v3  ;;  %v953_v57 = vld [vmem:[%s4995_s12 + $0x1278] sm:$0xff] }
 0x13a   : > { %4599 = vmatpush3.bf16.msra.mxu1 %v4598_v9  ;;  %4569 = vmatprep.subr.bf16.mxu0 %v4568_v10  ;;  %v995_v9 = vld [vmem:[%s4995_s12 + $0x13c8] sm:$0xff]  ;;  %v4618_v10 = vpack.c.bf16 %v945_v2, %v944_v1  ;;  %v4620_v12 = vpack.c.bf16 %v963_v7, %v962_v6  ;;  %v985_v61 = vld [vmem:[%s4995_s12 + $0x1378] sm:$0xff]  ;;  %v1002_v5 = vld [vmem:[%s4995_s12 + $0x1400] sm:$0xff] }
 0x13b   : > { %4601 = vmatprep.subr.bf16.mxu1 %v4600_v15  ;;  %v947_v14 = vld [vmem:[%s4995_s12 + $0x1248] sm:$0xff]  ;;  %v978_v15 = vld [vmem:[%s4995_s12 + $0x1340] sm:$0xff]  ;;  %v4652_v16 = vpack.c.bf16 %v995_v9, %v994_v8  ;;  %v1025_v40 = vld [vmem:[%s4995_s12 + $0x14b8] sm:$0xff] }
 0x13c   : > { %v1051_v1 = vld [vmem:[%s4995_s12 + $0x1588] sm:$0xff]  ;;  %v1034_v7 = vld [vmem:[%s4995_s12 + $0x1500] sm:$0xff] }
 0x13d   : > { %4571 = vmatpush3.bf16.msra.mxu0 %v4570_v22  ;;  %v997_v22 = vld [vmem:[%s4995_s12 + $0x13d8] sm:$0xff]  ;;  %v1003_v6 = vld [vmem:[%s4995_s12 + $0x1408] sm:$0xff] }
 0x13e   : > { %4603 = vmatpush3.bf16.msra.mxu1 %v4602_v38  ;;  %4605 = vmatprep.subr.bf16.mxu0 %v4604_v23  ;;  %v4622_v38 = vpack.c.bf16 %v947_v14, %v946_v13  ;;  %v4654_v23 = vpack.c.bf16 %v979_v17, %v978_v15  ;;  %v4656_v28 = vpack.c.bf16 %v997_v22, %v996_v20  ;;  %v1035_v9 = vld [vmem:[%s4995_s12 + $0x1508] sm:$0xff]  ;;  %v1053_v13 = vld [vmem:[%s4995_s12 + $0x1598] sm:$0xff]  ;;  %v349_v14 = vld [vmem:[%s4990_s8 + $0x120] sm:$0xff] }
 0x13f   : > { %4637 = vmatprep.subr.bf16.mxu1 %v4636_v27  ;;  %v980_v27 = vld [vmem:[%s4995_s12 + $0x1350] sm:$0xff]  ;;  %v4670_v15 = vpack.c.bf16 %v1003_v6, %v1002_v5  ;;  %v4702_v17 = vpack.c.bf16 %v1035_v9, %v1034_v7  ;;  %v1005_v20 = vld [vmem:[%s4995_s12 + $0x1418] sm:$0xff] }
 0x140   : > { %2331 = vmatmul.mubr.f32.vlgmr.msra.gmra.mrb[16].mxu0 %v345_v33  ;;  %v999_v33 = vld [vmem:[%s4995_s12 + $0x13e8] sm:$0xff]  ;;  %v1036_v22 = vld [vmem:[%s4995_s12 + $0x1510] sm:$0xff]  ;;  %v1013_v7 = vld [vmem:[%s4995_s12 + $0x1458] sm:$0xff] }
 0x141   : > { %4607 = vmatpush3.bf16.msra.mxu0 %v4606_v34  ;;  %2401 = vmatmul.mubr.f32.vlgmr.msra.gmra.mrb[16].mxu1 %v347_v35  ;;  %v4626_v34 = vpack.c.bf16 %v949_v26, %v948_v25  ;;  %v4658_v35 = vpack.c.bf16 %v981_v29, %v980_v27  ;;  %v1023_v25 = vld [vmem:[%s4995_s12 + $0x14a8] sm:$0xff]  ;;  %v1054_v26 = vld [vmem:[%s4995_s12 + $0x15a0] sm:$0xff]  ;;  %v4674_v29 = vpack.c.bf16 %v1005_v20, %v1004_v19  ;;  %v1012_v6 = vld [vmem:[%s4995_s12 + $0x1450] sm:$0xff] }
 0x142   : > { %4639 = vmatpush3.bf16.msra.mxu1 %v4638_v36  ;;  %4609 = vmatprep.subr.bf16.mxu0 %v4608_v37  ;;  %v4628_v36 = vpack.c.bf16 %v967_v31, %v966_v30  ;;  %v950_v37 = vld [vmem:[%s4995_s12 + $0x1260] sm:$0xff]  ;;  %v1055_v27 = vld [vmem:[%s4995_s12 + $0x15a8] sm:$0xff]  ;;  %v356_v30 = vld [vmem:[%s4990_s8 + $0x158] sm:$0xff] }
 0x143   : > { %4641 = vmatprep.subr.bf16.mxu1 %v4640_v42  ;;  %2470 = vmatprep.mubr.f32.mxu0 %v350_v48  ;;  %v4660_v42 = vpack.c.bf16 %v999_v33, %v998_v32  ;;  %v1000_v48 = vld [vmem:[%s4995_s12 + $0x13f0] sm:$0xff]  ;;  %v1006_v33 = vld [vmem:[%s4995_s12 + $0x1420] sm:$0xff]  ;;  %v1015_v19 = vld [vmem:[%s4995_s12 + $0x1468] sm:$0xff] }
 0x144   : > { %2540 = vmatprep.mubr.f32.mxu1 %v352_v50  ;;  %v1046_v20 = vld [vmem:[%s4995_s12 + $0x1560] sm:$0xff] }
 0x145   : > { %4611 = vmatpush3.bf16.msra.mxu0 %v4610_v49  ;;  %v1001_v49 = vld [vmem:[%s4995_s12 + $0x13f8] sm:$0xff] }
 0x146   : > { %4643 = vmatpush3.bf16.msra.mxu1 %v4642_v51  ;;  %4613 = vmatprep.subr.bf16.mxu0 %v4612_v52  ;;  %v4630_v52 = vpack.c.bf16 %v951_v39, %v950_v37  ;;  %v4664_v60 = vpack.c.bf16 %v1001_v49, %v1000_v48  ;;  %v1039_v37 = vld [vmem:[%s4995_s12 + $0x1528] sm:$0xff]  ;;  %v1024_v39 = vld [vmem:[%s4995_s12 + $0x14b0] sm:$0xff] }
 0x147   : > { %4645 = vmatprep.subr.bf16.mxu1 %v4644_v56  ;;  %v952_v56 = vld [vmem:[%s4995_s12 + $0x1270] sm:$0xff]  ;;  %v4680_v45 = vpack.c.bf16 %v1025_v40, %v1024_v39 }
 0x148   : > { %v4634_v3 = vpack.c.bf16 %v953_v57, %v952_v56  ;;  %v1040_v48 = vld [vmem:[%s4995_s12 + $0x1530] sm:$0xff] }
 0x149   : > { %4615 = vmatpush3.bf16.msra.mxu0 %v4614_v62  ;;  %v1018_v62 = vld [vmem:[%s4995_s12 + $0x1480] sm:$0xff]  ;;  %v1048_v39 = vld [vmem:[%s4995_s12 + $0x1570] sm:$0xff] }
 0x14a   : > { %4647 = vmatpush3.bf16.msra.mxu1 %v4646_v63  ;;  %4617 = vmatprep.subr.bf16.mxu0 %v4616_v0  ;;  %v1019_v63 = vld [vmem:[%s4995_s12 + $0x1488] sm:$0xff]  ;;  %v1050_v0 = vld [vmem:[%s4995_s12 + $0x1580] sm:$0xff] }
 0x14b   : > { %4649 = vmatprep.subr.bf16.mxu1 %v4648_v4  ;;  %v4668_v4 = vpack.c.bf16 %v1019_v63, %v1018_v62  ;;  %v4700_v8 = vpack.c.bf16 %v1051_v1, %v1050_v0  ;;  %v1043_v62 = vld [vmem:[%s4995_s12 + $0x1548] sm:$0xff]  ;;  %v1028_v63 = vld [vmem:[%s4995_s12 + $0x14d0] sm:$0xff]  ;;  %v1029_v0 = vld [vmem:[%s4995_s12 + $0x14d8] sm:$0xff] }
 0x14c   : > { %v1060_v1 = vld [vmem:[%s4995_s12 + $0x15d0] sm:$0xff]  ;;  %v4688_v5 = vpack.c.bf16 %v1029_v0, %v1028_v63 }
 0x14d   : > { %4619 = vmatpush3.bf16.msra.mxu0 %v4618_v10  ;;  %v1020_v10 = vld [vmem:[%s4995_s12 + $0x1490] sm:$0xff] }
 0x14e   : > { %4651 = vmatpush3.bf16.msra.mxu1 %v4650_v11  ;;  %4621 = vmatprep.subr.bf16.mxu0 %v4620_v12  ;;  %v1021_v11 = vld [vmem:[%s4995_s12 + $0x1498] sm:$0xff]  ;;  %v1052_v12 = vld [vmem:[%s4995_s12 + $0x1590] sm:$0xff] }
 0x14f   : > { %4653 = vmatprep.subr.bf16.mxu1 %v4652_v16  ;;  %v351_v16 = vld [vmem:[%s4990_s8 + $0x130] sm:$0xff]  ;;  %v4672_v18 = vpack.c.bf16 %v1021_v11, %v1020_v10  ;;  %v1045_v10 = vld [vmem:[%s4995_s12 + $0x1558] sm:$0xff]  ;;  %v1030_v11 = vld [vmem:[%s4995_s12 + $0x14e0] sm:$0xff] }
 0x150   : > { %v1068_v0 = vld [vmem:[%s4995_s12 + $0x1610] sm:$0xff] }
 0x151   : > { %4623 = vmatpush3.bf16.msra.mxu0 %v4622_v38  ;;  %v4704_v38 = vpack.c.bf16 %v1053_v13, %v1052_v12  ;;  %v1031_v12 = vld [vmem:[%s4995_s12 + $0x14e8] sm:$0xff]  ;;  %v1062_v13 = vld [vmem:[%s4995_s12 + $0x15e0] sm:$0xff] }
 0x152   : > { %4655 = vmatpush3.bf16.msra.mxu1 %v4654_v23  ;;  %4625 = vmatprep.subr.bf16.mxu0 %v4624_v24  ;;  %v1037_v23 = vld [vmem:[%s4995_s12 + $0x1518] sm:$0xff]  ;;  %v1022_v24 = vld [vmem:[%s4995_s12 + $0x14a0] sm:$0xff] }
 0x153   : > { %v3292_v41 = vpop.f32.mrb[4].mxu0  ;;  %4657 = vmatprep.subr.bf16.mxu1 %v4656_v28  ;;  %v354_v28 = vld [vmem:[%s4990_s8 + $0x148] sm:$0xff]  ;;  %v4706_v31 = vpack.c.bf16 %v1037_v23, %v1036_v22  ;;  %v4676_v32 = vpack.c.bf16 %v1023_v25, %v1022_v24  ;;  %v1032_v24 = vld [vmem:[%s4995_s12 + $0x14f0] sm:$0xff]  ;;  %v1033_v25 = vld [vmem:[%s4995_s12 + $0x14f8] sm:$0xff] }
 0x154   : > { %v3293_v46 = vpop.f32.mrb[5].mxu0  ;;  %v3327_v47 = vpop.f32.mrb[4].mxu1  ;;  %v1047_v23 = vld [vmem:[%s4995_s12 + $0x1568] sm:$0xff] }
 0x155   : > { %v3294_v50 = vadd.f32 %v3293_v46, %v3292_v41  ;;  %4627 = vmatpush3.bf16.msra.mxu0 %v4626_v34  ;;  %v3328_v51 = vpop.f32.mrb[5].mxu1  ;;  %v1007_v34 = vld [vmem:[%s4995_s12 + $0x1428] sm:$0xff]  ;;  %v1056_v41 = vld [vmem:[%s4995_s12 + $0x15b0] sm:$0xff] }
 0x156   : > { %v3329_v53 = vadd.f32 %v3328_v51, %v3327_v47  ;;  %4659 = vmatpush3.bf16.msra.mxu1 %v4658_v35  ;;  %4629 = vmatprep.subr.bf16.mxu0 %v4628_v36  ;;  %v1038_v35 = vld [vmem:[%s4995_s12 + $0x1520] sm:$0xff]  ;;  %v4708_v36 = vpack.c.bf16 %v1055_v27, %v1054_v26  ;;  %v4678_v43 = vpack.c.bf16 %v1007_v34, %v1006_v33  ;;  %v1008_v46 = vld [vmem:[%s4995_s12 + $0x1430] sm:$0xff]  ;;  %v1009_v47 = vld [vmem:[%s4995_s12 + $0x1438] sm:$0xff] }
 0x157   : > { %v1493_v59 = vadd.f32 %v3294_v50, %v5615_v21  ;;  %4661 = vmatprep.subr.bf16.mxu1 %v4660_v42  ;;  %v4666_v21 = vpack.c.bf16 %v985_v61, %v984_v58  ;;  %v1057_v42 = vld [vmem:[%s4995_s12 + $0x15b8] sm:$0xff]  ;;  %v4710_v44 = vpack.c.bf16 %v1039_v37, %v1038_v35  ;;  %v1026_v51 = vld [vmem:[%s4995_s12 + $0x14c0] sm:$0xff]  ;;  %v4726_v34 = vpack.c.bf16 %v1047_v23, %v1046_v20 }
 0x158   : > { %v4712_v49 = vpack.c.bf16 %v1057_v42, %v1056_v41  ;;  %v1041_v50 = vld [vmem:[%s4995_s12 + $0x1538] sm:$0xff]  ;;  %v1010_v58 = vld [vmem:[%s4995_s12 + $0x1440] sm:$0xff]  ;;  %v4696_v35 = vpack.c.bf16 %v1033_v25, %v1032_v24 }
 0x159   : > { %v5686_v2 = vadd.f32 %v3329_v53, %v1493_v59  ;;  %4631 = vmatpush3.bf16.msra.mxu0 %v4630_v52  ;;  %v1027_v52 = vld [vmem:[%s4995_s12 + $0x14c8] sm:$0xff]  ;;  %v1058_v53 = vld [vmem:[%s4995_s12 + $0x15c0] sm:$0xff]  ;;  %v4714_v56 = vpack.c.bf16 %v1041_v50, %v1040_v48  ;;  %v1017_v37 = vld [vmem:[%s4995_s12 + $0x1478] sm:$0xff] }
 0x15a   : > { %4663 = vmatpush3.bf16.msra.mxu1 %v4662_v54  ;;  %4633 = vmatprep.subr.bf16.mxu0 %v4632_v55  ;;  %v1059_v54 = vld [vmem:[%s4995_s12 + $0x15c8] sm:$0xff]  ;;  %v4682_v55 = vpack.c.bf16 %v1009_v47, %v1008_v46  ;;  %v4684_v57 = vpack.c.bf16 %v1027_v52, %v1026_v51  ;;  %v1049_v42 = vld [vmem:[%s4995_s12 + $0x1578] sm:$0xff]  ;;  %v1066_v50 = vld [vmem:[%s4995_s12 + $0x1600] sm:$0xff] }
 0x15b   : > { %4665 = vmatprep.subr.bf16.mxu1 %v4664_v60  ;;  %v1011_v59 = vld [vmem:[%s4995_s12 + $0x1448] sm:$0xff]  ;;  %v1042_v60 = vld [vmem:[%s4995_s12 + $0x1540] sm:$0xff]  ;;  %v4716_v61 = vpack.c.bf16 %v1059_v54, %v1058_v53  ;;  %v1089_v20 = vld [vmem:[%s4995_s12 + $0x16b8] sm:$0xff] }
 0x15c   : > { %v1115_v46 = vld [vmem:[%s4995_s12 + $0x1788] sm:$0xff]  ;;  %v1098_v52 = vld [vmem:[%s4995_s12 + $0x1700] sm:$0xff] }
 0x15d   : > { %4635 = vmatpush3.bf16.msra.mxu0 %v4634_v3  ;;  %v1061_v3 = vld [vmem:[%s4995_s12 + $0x15d8] sm:$0xff]  ;;  %v1067_v51 = vld [vmem:[%s4995_s12 + $0x1608] sm:$0xff] }
 0x15e   : > { %4667 = vmatpush3.bf16.msra.mxu1 %v4666_v21  ;;  %4669 = vmatprep.subr.bf16.mxu0 %v4668_v4  ;;  %v4686_v21 = vpack.c.bf16 %v1011_v59, %v1010_v58  ;;  %v4718_v4 = vpack.c.bf16 %v1043_v62, %v1042_v60  ;;  %v4720_v9 = vpack.c.bf16 %v1061_v3, %v1060_v1  ;;  %v1099_v54 = vld [vmem:[%s4995_s12 + $0x1708] sm:$0xff]  ;;  %v1117_v58 = vld [vmem:[%s4995_s12 + $0x1798] sm:$0xff]  ;;  %v353_v59 = vld [vmem:[%s4990_s8 + $0x140] sm:$0xff] }
 0x15f   : > { %4701 = vmatprep.subr.bf16.mxu1 %v4700_v8  ;;  %v1044_v8 = vld [vmem:[%s4995_s12 + $0x1550] sm:$0xff]  ;;  %v4734_v60 = vpack.c.bf16 %v1067_v51, %v1066_v50  ;;  %v4766_v62 = vpack.c.bf16 %v1099_v54, %v1098_v52  ;;  %v1069_v1 = vld [vmem:[%s4995_s12 + $0x1618] sm:$0xff] }
 0x160   : > { %2471 = vmatmul.mubr.f32.vlgmr.msra.gmra.mrb[18].mxu0 %v349_v14  ;;  %v1063_v14 = vld [vmem:[%s4995_s12 + $0x15e8] sm:$0xff]  ;;  %v1100_v3 = vld [vmem:[%s4995_s12 + $0x1710] sm:$0xff]  ;;  %v1077_v52 = vld [vmem:[%s4995_s12 + $0x1658] sm:$0xff] }
 0x161   : > { %4671 = vmatpush3.bf16.msra.mxu0 %v4670_v15  ;;  %2541 = vmatmul.mubr.f32.vlgmr.msra.gmra.mrb[18].mxu1 %v351_v16  ;;  %v4690_v15 = vpack.c.bf16 %v1013_v7, %v1012_v6  ;;  %v4722_v16 = vpack.c.bf16 %v1045_v10, %v1044_v8  ;;  %v1087_v6 = vld [vmem:[%s4995_s12 + $0x16a8] sm:$0xff]  ;;  %v1118_v7 = vld [vmem:[%s4995_s12 + $0x17a0] sm:$0xff]  ;;  %v4738_v10 = vpack.c.bf16 %v1069_v1, %v1068_v0  ;;  %v1076_v51 = vld [vmem:[%s4995_s12 + $0x1650] sm:$0xff] }
 0x162   : > { %4703 = vmatpush3.bf16.msra.mxu1 %v4702_v17  ;;  %4673 = vmatprep.subr.bf16.mxu0 %v4672_v18  ;;  %v4692_v17 = vpack.c.bf16 %v1031_v12, %v1030_v11  ;;  %v1014_v18 = vld [vmem:[%s4995_s12 + $0x1460] sm:$0xff]  ;;  %v1119_v8 = vld [vmem:[%s4995_s12 + $0x17a8] sm:$0xff]  ;;  %v360_v11 = vld [vmem:[%s4990_s8 + $0x178] sm:$0xff] }
 0x163   : > { %4705 = vmatprep.subr.bf16.mxu1 %v4704_v38  ;;  %2610 = vmatprep.mubr.f32.mxu0 %v354_v28  ;;  %v4724_v38 = vpack.c.bf16 %v1063_v14, %v1062_v13  ;;  %v1064_v28 = vld [vmem:[%s4995_s12 + $0x15f0] sm:$0xff]  ;;  %v1070_v14 = vld [vmem:[%s4995_s12 + $0x1620] sm:$0xff]  ;;  %v1079_v0 = vld [vmem:[%s4995_s12 + $0x1668] sm:$0xff] }
 0x164   : > { %2680 = vmatprep.mubr.f32.mxu1 %v356_v30  ;;  %v1110_v1 = vld [vmem:[%s4995_s12 + $0x1760] sm:$0xff] }
 0x165   : > { %4675 = vmatpush3.bf16.msra.mxu0 %v4674_v29  ;;  %v1065_v29 = vld [vmem:[%s4995_s12 + $0x15f8] sm:$0xff] }
 0x166   : > { %4707 = vmatpush3.bf16.msra.mxu1 %v4706_v31  ;;  %4677 = vmatprep.subr.bf16.mxu0 %v4676_v32  ;;  %v4694_v32 = vpack.c.bf16 %v1015_v19, %v1014_v18  ;;  %v4728_v41 = vpack.c.bf16 %v1065_v29, %v1064_v28  ;;  %v1103_v18 = vld [vmem:[%s4995_s12 + $0x1728] sm:$0xff]  ;;  %v1088_v19 = vld [vmem:[%s4995_s12 + $0x16b0] sm:$0xff] }
 0x167   : > { %4709 = vmatprep.subr.bf16.mxu1 %v4708_v36  ;;  %v1016_v36 = vld [vmem:[%s4995_s12 + $0x1470] sm:$0xff]  ;;  %v4744_v25 = vpack.c.bf16 %v1089_v20, %v1088_v19 }
 0x168   : > { %v4698_v48 = vpack.c.bf16 %v1017_v37, %v1016_v36  ;;  %v1104_v28 = vld [vmem:[%s4995_s12 + $0x1730] sm:$0xff] }
 0x169   : > { %4679 = vmatpush3.bf16.msra.mxu0 %v4678_v43  ;;  %v1082_v43 = vld [vmem:[%s4995_s12 + $0x1680] sm:$0xff] }
 0x16a   : > { %4711 = vmatpush3.bf16.msra.mxu1 %v4710_v44  ;;  %4681 = vmatprep.subr.bf16.mxu0 %v4680_v45  ;;  %v1083_v44 = vld [vmem:[%s4995_s12 + $0x1688] sm:$0xff]  ;;  %v1114_v45 = vld [vmem:[%s4995_s12 + $0x1780] sm:$0xff] }
 0x16b   : > { %4713 = vmatprep.subr.bf16.mxu1 %v4712_v49  ;;  %v4732_v49 = vpack.c.bf16 %v1083_v44, %v1082_v43  ;;  %v4764_v53 = vpack.c.bf16 %v1115_v46, %v1114_v45  ;;  %v1107_v43 = vld [vmem:[%s4995_s12 + $0x1748] sm:$0xff]  ;;  %v1092_v44 = vld [vmem:[%s4995_s12 + $0x16d0] sm:$0xff]  ;;  %v1093_v45 = vld [vmem:[%s4995_s12 + $0x16d8] sm:$0xff] }
 0x16c   : > { %v1124_v46 = vld [vmem:[%s4995_s12 + $0x17d0] sm:$0xff]  ;;  %v4752_v50 = vpack.c.bf16 %v1093_v45, %v1092_v44 }
 0x16d   : > { %4683 = vmatpush3.bf16.msra.mxu0 %v4682_v55  ;;  %v1084_v55 = vld [vmem:[%s4995_s12 + $0x1690] sm:$0xff] }
 0x16e   : > { %4715 = vmatpush3.bf16.msra.mxu1 %v4714_v56  ;;  %4685 = vmatprep.subr.bf16.mxu0 %v4684_v57  ;;  %v1085_v56 = vld [vmem:[%s4995_s12 + $0x1698] sm:$0xff]  ;;  %v1116_v57 = vld [vmem:[%s4995_s12 + $0x1790] sm:$0xff] }
 0x16f   : > { %4717 = vmatprep.subr.bf16.mxu1 %v4716_v61  ;;  %v355_v61 = vld [vmem:[%s4990_s8 + $0x150] sm:$0xff]  ;;  %v4736_v63 = vpack.c.bf16 %v1085_v56, %v1084_v55  ;;  %v1109_v55 = vld [vmem:[%s4995_s12 + $0x1758] sm:$0xff]  ;;  %v1094_v56 = vld [vmem:[%s4995_s12 + $0x16e0] sm:$0xff] }
 0x170   : > { %v1140_v45 = vld [vmem:[%s4995_s12 + $0x1850] sm:$0xff] }
 0x171   : > { %4687 = vmatpush3.bf16.msra.mxu0 %v4686_v21  ;;  %v4768_v21 = vpack.c.bf16 %v1117_v58, %v1116_v57  ;;  %v1095_v57 = vld [vmem:[%s4995_s12 + $0x16e8] sm:$0xff]  ;;  %v1126_v58 = vld [vmem:[%s4995_s12 + $0x17e0] sm:$0xff] }
 0x172   : > { %4719 = vmatpush3.bf16.msra.mxu1 %v4718_v4  ;;  %4689 = vmatprep.subr.bf16.mxu0 %v4688_v5  ;;  %v1101_v4 = vld [vmem:[%s4995_s12 + $0x1718] sm:$0xff]  ;;  %v1086_v5 = vld [vmem:[%s4995_s12 + $0x16a0] sm:$0xff] }
 0x173   : > { %v3362_v22 = vpop.f32.mrb[6].mxu0  ;;  %4721 = vmatprep.subr.bf16.mxu1 %v4720_v9  ;;  %v358_v9 = vld [vmem:[%s4990_s8 + $0x168] sm:$0xff]  ;;  %v4770_v12 = vpack.c.bf16 %v1101_v4, %v1100_v3  ;;  %v4740_v13 = vpack.c.bf16 %v1087_v6, %v1086_v5  ;;  %v1096_v5 = vld [vmem:[%s4995_s12 + $0x16f0] sm:$0xff]  ;;  %v1097_v6 = vld [vmem:[%s4995_s12 + $0x16f8] sm:$0xff] }
 0x174   : > { %v3363_v26 = vpop.f32.mrb[7].mxu0  ;;  %v3397_v27 = vpop.f32.mrb[6].mxu1  ;;  %v1111_v4 = vld [vmem:[%s4995_s12 + $0x1768] sm:$0xff] }
 0x175   : > { %v3364_v30 = vadd.f32 %v3363_v26, %v3362_v22  ;;  %4691 = vmatpush3.bf16.msra.mxu0 %v4690_v15  ;;  %v3398_v31 = vpop.f32.mrb[7].mxu1  ;;  %v1071_v15 = vld [vmem:[%s4995_s12 + $0x1628] sm:$0xff]  ;;  %v1120_v22 = vld [vmem:[%s4995_s12 + $0x17b0] sm:$0xff] }
 0x176   : > { %v3399_v33 = vadd.f32 %v3398_v31, %v3397_v27  ;;  %4723 = vmatpush3.bf16.msra.mxu1 %v4722_v16  ;;  %4693 = vmatprep.subr.bf16.mxu0 %v4692_v17  ;;  %v1102_v16 = vld [vmem:[%s4995_s12 + $0x1720] sm:$0xff]  ;;  %v4772_v17 = vpack.c.bf16 %v1119_v8, %v1118_v7  ;;  %v4742_v23 = vpack.c.bf16 %v1071_v15, %v1070_v14  ;;  %v1072_v26 = vld [vmem:[%s4995_s12 + $0x1630] sm:$0xff]  ;;  %v1073_v27 = vld [vmem:[%s4995_s12 + $0x1638] sm:$0xff] }
 0x177   : > { %v1633_v40 = vadd.f32 %v3364_v30, %v5686_v2  ;;  %4725 = vmatprep.subr.bf16.mxu1 %v4724_v38  ;;  %v4730_v2 = vpack.c.bf16 %v1049_v42, %v1048_v39  ;;  %v1121_v38 = vld [vmem:[%s4995_s12 + $0x17b8] sm:$0xff]  ;;  %v4774_v24 = vpack.c.bf16 %v1103_v18, %v1102_v16  ;;  %v1090_v31 = vld [vmem:[%s4995_s12 + $0x16c0] sm:$0xff]  ;;  %v4790_v15 = vpack.c.bf16 %v1111_v4, %v1110_v1 }
 0x178   : > { %v4776_v29 = vpack.c.bf16 %v1121_v38, %v1120_v22  ;;  %v1105_v30 = vld [vmem:[%s4995_s12 + $0x1738] sm:$0xff]  ;;  %v1074_v39 = vld [vmem:[%s4995_s12 + $0x1640] sm:$0xff]  ;;  %v4760_v16 = vpack.c.bf16 %v1097_v6, %v1096_v5  ;;  %v1112_v22 = vld [vmem:[%s4995_s12 + $0x1770] sm:$0xff] }
 0x179   : > { %v5757_v47 = vadd.f32 %v3399_v33, %v1633_v40  ;;  %4695 = vmatpush3.bf16.msra.mxu0 %v4694_v32  ;;  %v1091_v32 = vld [vmem:[%s4995_s12 + $0x16c8] sm:$0xff]  ;;  %v1122_v33 = vld [vmem:[%s4995_s12 + $0x17c0] sm:$0xff]  ;;  %v4778_v36 = vpack.c.bf16 %v1105_v30, %v1104_v28  ;;  %v1081_v18 = vld [vmem:[%s4995_s12 + $0x1678] sm:$0xff] }
 0x17a   : > { %4727 = vmatpush3.bf16.msra.mxu1 %v4726_v34  ;;  %4697 = vmatprep.subr.bf16.mxu0 %v4696_v35  ;;  %v1123_v34 = vld [vmem:[%s4995_s12 + $0x17c8] sm:$0xff]  ;;  %v4746_v35 = vpack.c.bf16 %v1073_v27, %v1072_v26  ;;  %v4748_v37 = vpack.c.bf16 %v1091_v32, %v1090_v31  ;;  %v1113_v38 = vld [vmem:[%s4995_s12 + $0x1778] sm:$0xff]  ;;  %v1130_v26 = vld [vmem:[%s4995_s12 + $0x1800] sm:$0xff] }
 0x17b   : > { %4729 = vmatprep.subr.bf16.mxu1 %v4728_v41  ;;  %v1075_v40 = vld [vmem:[%s4995_s12 + $0x1648] sm:$0xff]  ;;  %v1106_v41 = vld [vmem:[%s4995_s12 + $0x1740] sm:$0xff]  ;;  %v4780_v42 = vpack.c.bf16 %v1123_v34, %v1122_v33  ;;  %v359_v30 = vld [vmem:[%s4990_s8 + $0x170] sm:$0xff] }
 0x17c   : > { %v1131_v27 = vld [vmem:[%s4995_s12 + $0x1808] sm:$0xff]  ;;  %v1132_v31 = vld [vmem:[%s4995_s12 + $0x1810] sm:$0xff]  ;;  %v1133_v32 = vld [vmem:[%s4995_s12 + $0x1818] sm:$0xff] }
 0x17d   : > { %4699 = vmatpush3.bf16.msra.mxu0 %v4698_v48  ;;  %v1125_v48 = vld [vmem:[%s4995_s12 + $0x17d8] sm:$0xff]  ;;  %v4797_v28 = vpack.c.bf16 %v1131_v27, %v1130_v26  ;;  %v4800_v33 = vpack.c.bf16 %v1133_v32, %v1132_v31  ;;  %v1134_v34 = vld [vmem:[%s4995_s12 + $0x1820] sm:$0xff] }
 0x17e   : > { %4731 = vmatpush3.bf16.msra.mxu1 %v4730_v2  ;;  %4733 = vmatprep.subr.bf16.mxu0 %v4732_v49  ;;  %v4750_v2 = vpack.c.bf16 %v1075_v40, %v1074_v39  ;;  %v4782_v49 = vpack.c.bf16 %v1107_v43, %v1106_v41  ;;  %v4784_v54 = vpack.c.bf16 %v1125_v48, %v1124_v46  ;;  %v1136_v39 = vld [vmem:[%s4995_s12 + $0x1830] sm:$0xff]  ;;  %v1137_v40 = vld [vmem:[%s4995_s12 + $0x1838] sm:$0xff]  ;;  %v1139_v43 = vld [vmem:[%s4995_s12 + $0x1848] sm:$0xff] }
 0x17f   : > { %4765 = vmatprep.subr.bf16.mxu1 %v4764_v53  ;;  %v1108_v53 = vld [vmem:[%s4995_s12 + $0x1750] sm:$0xff]  ;;  %v4806_v41 = vpack.c.bf16 %v1137_v40, %v1136_v39  ;;  %v1141_v46 = vld [vmem:[%s4995_s12 + $0x1858] sm:$0xff] }
 0x180   : > { %2611 = vmatmul.mubr.f32.vlgmr.msra.gmra.mrb[20].mxu0 %v353_v59  ;;  %v1127_v59 = vld [vmem:[%s4995_s12 + $0x17e8] sm:$0xff]  ;;  %v4812_v48 = vpack.c.bf16 %v1141_v46, %v1140_v45 }
 0x181   : > { %4735 = vmatpush3.bf16.msra.mxu0 %v4734_v60  ;;  %2681 = vmatmul.mubr.f32.vlgmr.msra.gmra.mrb[20].mxu1 %v355_v61  ;;  %v4754_v60 = vpack.c.bf16 %v1077_v52, %v1076_v51  ;;  %v4786_v61 = vpack.c.bf16 %v1109_v55, %v1108_v53 }
 0x182   : > { %4767 = vmatpush3.bf16.msra.mxu1 %v4766_v62  ;;  %4737 = vmatprep.subr.bf16.mxu0 %v4736_v63  ;;  %v4756_v62 = vpack.c.bf16 %v1095_v57, %v1094_v56  ;;  %v1078_v63 = vld [vmem:[%s4995_s12 + $0x1660] sm:$0xff]  ;;  %v1144_v57 = vld [vmem:[%s4995_s12 + $0x1870] sm:$0xff] }
 0x183   : > { %4769 = vmatprep.subr.bf16.mxu1 %v4768_v21  ;;  %2750 = vmatprep.mubr.f32.mxu0 %v358_v9  ;;  %v4788_v21 = vpack.c.bf16 %v1127_v59, %v1126_v58  ;;  %v1128_v9 = vld [vmem:[%s4995_s12 + $0x17f0] sm:$0xff]  ;;  %v1145_v58 = vld [vmem:[%s4995_s12 + $0x1878] sm:$0xff] }
 0x184   : > { %2820 = vmatprep.mubr.f32.mxu1 %v360_v11 }
 0x185   : > { %4739 = vmatpush3.bf16.msra.mxu0 %v4738_v10  ;;  %v1129_v10 = vld [vmem:[%s4995_s12 + $0x17f8] sm:$0xff] }
 0x186   : > { %4771 = vmatpush3.bf16.msra.mxu1 %v4770_v12  ;;  %4741 = vmatprep.subr.bf16.mxu0 %v4740_v13  ;;  %v4758_v13 = vpack.c.bf16 %v1079_v0, %v1078_v63  ;;  %v4792_v20 = vpack.c.bf16 %v1129_v10, %v1128_v9 }
 0x187   : > { %4773 = vmatprep.subr.bf16.mxu1 %v4772_v17  ;;  %v1080_v17 = vld [vmem:[%s4995_s12 + $0x1670] sm:$0xff] }
 0x189   : > { %4743 = vmatpush3.bf16.msra.mxu0 %v4742_v23 }
 0x18a   : > { %4775 = vmatpush3.bf16.msra.mxu1 %v4774_v24  ;;  %4745 = vmatprep.subr.bf16.mxu0 %v4744_v25  ;;  %v4762_v24 = vpack.c.bf16 %v1081_v18, %v1080_v17  ;;  %v4794_v25 = vpack.c.bf16 %v1113_v38, %v1112_v22 }
 0x18b   : > { %4777 = vmatprep.subr.bf16.mxu1 %v4776_v29  ;;  %v4919_v29 = vmov 0.0|0.0  }
 0x18d   : > { %4747 = vmatpush3.bf16.msra.mxu0 %v4746_v35  ;;  %v1135_v35 = vld [vmem:[%s4995_s12 + $0x1828] sm:$0xff] }
 0x18e   : > { %4779 = vmatpush3.bf16.msra.mxu1 %v4778_v36  ;;  %4749 = vmatprep.subr.bf16.mxu0 %v4748_v37  ;;  %v4921_v36 = vmov 0.0   ;;  %v4803_v37 = vpack.c.bf16 %v1135_v35, %v1134_v34 }
 0x18f   : > { %4781 = vmatprep.subr.bf16.mxu1 %v4780_v42  ;;  %v1138_v42 = vld [vmem:[%s4995_s12 + $0x1840] sm:$0xff] }
 0x190   : > { %v4809_v44 = vpack.c.bf16 %v1139_v43, %v1138_v42 }
 0x191   : > { %4751 = vmatpush3.bf16.msra.mxu0 %v4750_v2  ;;  %v1142_v2 = vld [vmem:[%s4995_s12 + $0x1860] sm:$0xff] }
 0x192   : > { %4783 = vmatpush3.bf16.msra.mxu1 %v4782_v49  ;;  %4753 = vmatprep.subr.bf16.mxu0 %v4752_v50  ;;  %v1143_v49 = vld [vmem:[%s4995_s12 + $0x1868] sm:$0xff] }
 0x193   : > { %v3432_v3 = vpop.f32.mrb[8].mxu0  ;;  %4785 = vmatprep.subr.bf16.mxu1 %v4784_v54  ;;  %v4815_v55 = vpack.c.bf16 %v1143_v49, %v1142_v2 }
 0x194   : > { %v3433_v7 = vpop.f32.mrb[9].mxu0  ;;  %v3467_v8 = vpop.f32.mrb[8].mxu1 }
 0x195   : > { %v3434_v11 = vadd.f32 %v3433_v7, %v3432_v3  ;;  %4755 = vmatpush3.bf16.msra.mxu0 %v4754_v60  ;;  %v3468_v12 = vpop.f32.mrb[9].mxu1 }
 0x196   : > { %v3469_v14 = vadd.f32 %v3468_v12, %v3467_v8  ;;  %4787 = vmatpush3.bf16.msra.mxu1 %v4786_v61  ;;  %4757 = vmatprep.subr.bf16.mxu0 %v4756_v62  ;;  %v4818_v61 = vpack.c.bf16 %v1145_v58, %v1144_v57  ;;  %v361_v62 = vld [vmem:[%s4990_s8 + $0x180] sm:$0xff]  ;;  %v2916_v57 = vld [vmem:[%s5905_s3 + $0x18] sm:$0xff] (!%p3111_p7)  ;;  %v4924_v58 = vmov (!%p3111_p7), 0.0  }
 0x197   : > { %v1773_v19 = vadd.f32 %v3434_v11, %v5757_v47  ;;  %4789 = vmatprep.subr.bf16.mxu1 %v4788_v21  ;;  %v357_v47 = vld [vmem:[%s4990_s8 + $0x160] sm:$0xff] }
 0x199   : > { %v1843_v23 = vadd.f32 %v3469_v14, %v1773_v19  ;;  %4759 = vmatpush3.bf16.msra.mxu0 %v4758_v13 }
 0x19a   : > { %4791 = vmatpush3.bf16.msra.mxu1 %v4790_v15  ;;  %4761 = vmatprep.subr.bf16.mxu0 %v4760_v16 }
 0x19b   : > { %4793 = vmatprep.subr.bf16.mxu1 %v4792_v20 }
 0x19d   : > { %4763 = vmatpush3.bf16.msra.mxu0 %v4762_v24 }
 0x19e   : > { %4795 = vmatpush3.bf16.msra.mxu1 %v4794_v25  ;;  %4796 = vmatprep.subr.bf16.mxu0 %v4919_v29 }
 0x1a0   : > { %2751 = vmatmul.mubr.f32.vlgmr.msra.gmra.mrb[22].mxu0 %v357_v47 }
 0x1a1   : > { %4798 = vmatpush3.bf16.msra.mxu0 %v4797_v28  ;;  %2821 = vmatmul.mubr.f32.vlgmr.msra.gmra.mrb[22].mxu1 %v359_v30 }
 0x1a2   : > { %4799 = vmatprep.subr.bf16.mxu0 %v4919_v29  ;;  %4014 = vmatprep.mubr.msk.f32.mxu0 %vm4920_vm1, %v4921_v36 }
 0x1a5   : > { %4801 = vmatpush3.bf16.msra.mxu0 %v4800_v33 }
 0x1a6   : > { %4802 = vmatprep.subr.bf16.mxu0 %v4919_v29 }
 0x1a9   : > { %4804 = vmatpush3.bf16.msra.mxu0 %v4803_v37 }
 0x1aa   : > { %4805 = vmatprep.subr.bf16.mxu0 %v4919_v29 }
 0x1ad   : > { %4807 = vmatpush3.bf16.msra.mxu0 %v4806_v41 }
 0x1ae   : > { %4808 = vmatprep.subr.bf16.mxu0 %v4919_v29 }
 0x1b1   : > { %4810 = vmatpush3.bf16.msra.mxu0 %v4809_v44 }
 0x1b2   : > { %4811 = vmatprep.subr.bf16.mxu0 %v4919_v29 }
 0x1b3   : > { %v3502_v50 = vpop.f32.mrb[10].mxu0 }
 0x1b4   : > { %v3503_v51 = vpop.f32.mrb[11].mxu0  ;;  %v3537_v52 = vpop.f32.mrb[10].mxu1 }
 0x1b5   : > { %v3504_v53 = vadd.f32 %v3503_v51, %v3502_v50  ;;  %4813 = vmatpush3.bf16.msra.mxu0 %v4812_v48  ;;  %v3538_v54 = vpop.f32.mrb[11].mxu1  ;;  %v312_v48 = vld [vmem:[#allocation2] sm:$0xff] }
 0x1b6   : > { %v3539_v56 = vadd.f32 %v3538_v54, %v3537_v52  ;;  %4814 = vmatprep.subr.bf16.mxu0 %v4919_v29  ;;  %v2913_v52 = vld [vmem:[%s5905_s3] sm:$0xff] (!%p3111_p7)  ;;  %v2915_v54 = vld [vmem:[%s5905_s3 + $0x10] sm:$0xff] (!%p3111_p7) }
 0x1b7   : > { %v1913_v59 = vadd.f32 %v3504_v53, %v1843_v23  ;;  %v2914_v53 = vld [vmem:[%s5905_s3 + $0x8] sm:$0xff] (!%p3111_p7) }
 0x1b9   : > { %v1983_v60 = vadd.f32 %v3539_v56, %v1913_v59  ;;  %4816 = vmatpush3.bf16.msra.mxu0 %v4815_v55  ;;  %v4922_v55 = vmov (!%p3111_p7), 0.0|0.0   ;;  %v4821_v56 = vpack.c.bf16 (!%p3111_p7), %v2914_v53, %v2913_v52 }
 0x1ba   : > { %4817 = vmatprep.subr.bf16.mxu0 %v4919_v29 }
 0x1bd   : > { %4819 = vmatpush3.bf16.msra.mxu0 %v4818_v61 }
 0x1be   : > { %4820 = vmatprep.subr.bf16.mxu0 (!%p3111_p7), %v4922_v55 }
 0x1c0   : > { %4015 = vmatmul.mubr.f32.vlgmr.msra.gmra.mrb[24].mxu0 %v361_v62  ;;  %v4824_v62 = vpack.c.bf16 (!%p3111_p7), %v2916_v57, %v2915_v54 }
 0x1c1   : > { %4025 = vmatprep.mubr.msk.f32.mxu0 (!%p3111_p7), %vm4923_vm3, %v4924_v58  ;;  %4822 = vmatpush3.bf16.msra.mxu0 (!%p3111_p7), %v4821_v56 }
 0x1c2   : > { %4823 = vmatprep.subr.bf16.mxu0 (!%p3111_p7), %v4922_v55 }
 0x1c5   : > { %4825 = vmatpush3.bf16.msra.mxu0 (!%p3111_p7), %v4824_v62 }
 0x1d3   : > { %v3572_v63 = vpop.f32.mrb[12].mxu0 }
 0x1d4   : > { %v3573_v0 = vpop.f32.mrb[13].mxu0  ;;  %v3607_v1 = vpop.f32.mrb[12].mxu1 }
 0x1d5   : > { %v3574_v3 = vadd.f32 %v3573_v0, %v3572_v63  ;;  %v3608_v21 = vpop.f32.mrb[13].mxu1  ;;  %v3113_v63 = vld [vmem:[#allocation3] ss:$0 sm:$0xff] (!%p3111_p7) }
 0x1d6   : > { %v3609_v4 = vadd.f32 %v3608_v21, %v3607_v1 }
 0x1d7   : > { %v2053_v5 = vadd.f32 %v3574_v3, %v1983_v60  ;;  %v3112_v60 = vld [vmem:[%s5904_s2] ss:$0 sm:$0xff] (!%p3111_p7) }
 0x1d9   : > { %v2123_v6 = vadd.f32 %v3609_v4, %v2053_v5 }
 0x1f3   : > { %v3642_v7 = vpop.f32.mrb[14].mxu0 }
 0x1f4   : > { %v3643_v8 = vpop.f32.mrb[15].mxu0  ;;  %v3677_v9 = vpop.f32.mrb[14].mxu1 }
 0x1f5   : > { %v3644_v10 = vadd.f32 %v3643_v8, %v3642_v7  ;;  %v3678_v11 = vpop.f32.mrb[15].mxu1 }
 0x1f6   : > { %v3679_v12 = vadd.f32 %v3678_v11, %v3677_v9 }
 0x1f7   : > { %v2193_v13 = vadd.f32 %v3644_v10, %v2123_v6 }
 0x1f9   : > { %v2263_v14 = vadd.f32 %v3679_v12, %v2193_v13 }
 0x213   : > { %v3712_v15 = vpop.f32.mrb[16].mxu0 }
 0x214   : > { %v3713_v16 = vpop.f32.mrb[17].mxu0  ;;  %v3747_v17 = vpop.f32.mrb[16].mxu1 }
 0x215   : > { %v3714_v18 = vadd.f32 %v3713_v16, %v3712_v15  ;;  %v3748_v19 = vpop.f32.mrb[17].mxu1 }
 0x216   : > { %v3749_v20 = vadd.f32 %v3748_v19, %v3747_v17 }
 0x217   : > { %v2333_v22 = vadd.f32 %v3714_v18, %v2263_v14 }
 0x219   : > { %v2403_v38 = vadd.f32 %v3749_v20, %v2333_v22 }
 0x233   : > { %v3782_v23 = vpop.f32.mrb[18].mxu0 }
 0x234   : > { %v3783_v24 = vpop.f32.mrb[19].mxu0  ;;  %v3817_v25 = vpop.f32.mrb[18].mxu1 }
 0x235   : > { %v3784_v26 = vadd.f32 %v3783_v24, %v3782_v23  ;;  %v3818_v27 = vpop.f32.mrb[19].mxu1 }
 0x236   : > { %v3819_v47 = vadd.f32 %v3818_v27, %v3817_v25 }
 0x237   : > { %v2473_v28 = vadd.f32 %v3784_v26, %v2403_v38 }
 0x239   : > { %v2543_v29 = vadd.f32 %v3819_v47, %v2473_v28 }
 0x253   : > { %v3852_v30 = vpop.f32.mrb[20].mxu0 }
 0x254   : > { %v3853_v31 = vpop.f32.mrb[21].mxu0  ;;  %v3887_v32 = vpop.f32.mrb[20].mxu1 }
 0x255   : > { %v3854_v33 = vadd.f32 %v3853_v31, %v3852_v30  ;;  %v3888_v34 = vpop.f32.mrb[21].mxu1 }
 0x256   : > { %v3889_v35 = vadd.f32 %v3888_v34, %v3887_v32 }
 0x257   : > { %v2613_v36 = vadd.f32 %v3854_v33, %v2543_v29 }
 0x259   : > { %v2683_v37 = vadd.f32 %v3889_v35, %v2613_v36 }
 0x273   : > { %v3922_v39 = vpop.f32.mrb[22].mxu0 }
 0x274   : > { %v3923_v40 = vpop.f32.mrb[23].mxu0  ;;  %v3957_v41 = vpop.f32.mrb[22].mxu1 }
 0x275   : > { %v3924_v42 = vadd.f32 %v3923_v40, %v3922_v39  ;;  %v3958_v43 = vpop.f32.mrb[23].mxu1 }
 0x276   : > { %v3959_v44 = vadd.f32 %v3958_v43, %v3957_v41 }
 0x277   : > { %v2753_v45 = vadd.f32 %v3924_v42, %v2683_v37 }
 0x279   : > { %v2823_v46 = vadd.f32 %v3959_v44, %v2753_v45 }
 0x292   : > { %2902 = sbr.rel (%p3111_p7) target bundleno = 889 (0x379), region = 48 }
 0x293   : > { %v2892_v2 = vpop.f32.mrb[24].mxu0 }
 0x294   : > { %v2893_v49 = vadd.f32 %v2892_v2, %v2823_v46  ;;  %v4016_v50 = vpop.f32.mrb[25].mxu0 }
 0x296   : > { %v2896_v51 = vadd.f32 %v2893_v49, %v312_v48 }
 0x298   : > { %2898 = vst.msk [vmem:[#allocation2] sm:$0xff] %vm2897_vm2, %v2896_v51 }
 0x29f   : > { %v2903_v59 = vld [vmem:[#allocation2] sm:$0xff] }
 0x2a0   : > { %v2911_v61 = vadd.f32 %v3112_v60, %v2903_v59 }
 0x2a2   : > { %2912 = vst.msk [vmem:[#allocation4] sm:$0xff] %vm2897_vm2, %v2911_v61  ;;  %4026 = vmatmul.mubr.msk.f32.vlgmr.msra.gmra.mrb[0].mxu0 %vm2897_vm2, %v2911_v61 }
 0x375   : > { %v2993_v0 = vpop.f32.mrb[0].mxu0 }
 0x376   : > { %v2994_v1 = vadd.f32 %v3113_v63, %v2993_v0  ;;  %v4027_v3 = vpop.f32.mrb[1].mxu0 }
 0x378   : > { %2998 = vst.msk [vmem:[%s5908_s6] sm:$0xff] %vm2997_vm4, %v2994_v1 }
 0x379 PF: > { %p5867_p8 = scmp.eq.s32.totalorder %s3104_s4, 3  ;;  %s4925_s29 = smov [#allocation4]  }
 0x37a   : > { %s3012_s30 = sshll.u32 %s4925_s29, 4  ;;  %s3013_s30 = int_to_ptr.vmem [resolvable:$true] %s3012_s30 }
 0x37b   : > { %s4864_s7 = scalar_lea.vmem %s3013_s30, 128  ;;  %p4871_p12 = scmp.lt.s32.totalorder %s3013_s30, %s3013_s30 }
 0x37c   : > { %p4865_p9 = scmp.ne.s32.totalorder %s3013_s30, %s4864_s7  ;;  %p4872_p13 = scmp.lt.s32.totalorder %s4864_s7, %s4864_s7 }
 0x37e   : > { %p4866_p10 = pnand %p4865_p9, %p5867_p8  ;;  %p4873_p0 = por %p4872_p13, %p4871_p12 }
 0x380   : > { %p4867_p11 = pneg %p4866_p10 }
 0x382   : > { %p4874_p1 = pnand %p4873_p0, %p4867_p11 }
 0x384   : > { %4877 = shalt.err (!%p4874_p1)
}
 0x385   : > { %s4878_s4 = scalar_lea.hbm %s5907_s5, 128 }
 0x386   : > { %p4879_p2 = scmp.ne.s32.totalorder %s5907_s5, %s4878_s4  ;;  %p4884_p5 = scmp.lt.u32.totalorder %s4878_s4, %s5907_s5 }
 0x388   : > { %p4880_p3 = pnand %p4879_p2, %p5867_p8 }
 0x38a   : > { %p4881_p4 = pneg %p4880_p3 }
 0x38c   : > { %p4886_p6 = pnand %p4884_p5, %p4881_p4 }
 0x38e   : > { %4889 = shalt.err (!%p4886_p6)
}
 0x38f   : > { %4827 = dma.vmem_to_hbm [thread:$0]  (%p5867_p8), %s3013_s30, 128, %s5907_s5, [#allocation5]  }
 0x390   : > { %4903 = dma.done.wait (%p5867_p8), [#allocation5], 128  }
 0x391   : > { %4905 = vsyncadd (%p5867_p8), [#allocation5], 4294967168 }
 0x392 PF: > { %s20_s25 = sadd.s32 1, %s4916_s25   ;;  %s5910_s23 = smov %s4912_s24 }
 0x393   : > { %p17_p7 = scmp.ge.s32.totalorder %s20_s25, 6   ;;  %s5911_s24 = smov %s5913_s26 }
 0x395   :  { %19 = sbr.rel (!%p17_p7) target bundleno = 5 (0x5), region = 91 }
 0x39c   :  { %3035 = vsyncpa [#allocation5], 1 }
 0x39d   :  { %3037 = vsyncpa [#allocation5 + $0x1], 1 }

</bundles_post_ra>
